<compile_context>
chip_gen: v7x
topology: tpu7x:2x2x1
jax: 0.10.0
libtpu: 0.0.40
codegen_flags: <defaults>
</compile_context>

<pallas_src>
import functools

import jax
import jax.numpy as jnp
import numpy as np
from jax.experimental import pallas as pl
from jax.experimental.pallas import tpu as pltpu


# ----------------------------------------------------------------------------
# Fused kernel: one grid step = one batch element.
# ----------------------------------------------------------------------------
def _upconv_fused_kernel(x_ref, cat_ref, wup_ref, bup_ref,
                         b1u_ref, b1c_ref, s1_ref, t1_ref,
                         b2_ref, s2_ref, t2_ref,
                         o_ref, up_pad_ref, y1_pad_ref,
                         *, Hlow, H, W, Cout_up, Cout):
    WCu = W * Cout_up          # packed width of the up-sampled map (=128 here)
    WCo = W * Cout             # packed width of the conv outputs   (=128 here)

    # ---- 1) ConvTranspose2d(k=2, s=2): one banded matmul on packed rows ----
    x_rows = x_ref[0]                                    # (Hlow, Wlow*Cin_up)
    rows = jnp.dot(x_rows, wup_ref[...],
                   preferred_element_type=jnp.float32) + bup_ref[...]
    even = rows[:, :WCu]       # packed output rows 0, 2, 4, ...
    odd = rows[:, WCu:]        # packed output rows 1, 3, 5, ...

    # ---- 2) de-interleave folded into row stores to a zero-padded scratch ----
    up_pad_ref[...] = jnp.zeros(up_pad_ref.shape, jnp.float32)
    for i in range(Hlow):
        up_pad_ref[pl.ds(1 + 2 * i, 1), pl.ds(Cout_up, WCu)] = even[i:i + 1, :]
        up_pad_ref[pl.ds(2 + 2 * i, 1), pl.ds(Cout_up, WCu)] = odd[i:i + 1, :]

    # ---- 3) conv1 + BN + ReLU: concat realized as two partial matmul sums ----
    upd = up_pad_ref[...]                                # (H+2, (W+2)*Cout_up)
    cat = cat_ref[0]                                     # (H+2, (W+2)*Ccat)
    acc1 = jnp.zeros((H, WCo), jnp.float32)
    for dh in range(3):
        acc1 = acc1 + jnp.dot(upd[dh:dh + H, :], b1u_ref[dh],
                              preferred_element_type=jnp.float32)
        acc1 = acc1 + jnp.dot(cat[dh:dh + H, :], b1c_ref[dh],
                              preferred_element_type=jnp.float32)
    y1 = jnp.maximum(acc1 * s1_ref[...] + t1_ref[...], 0.0)

    # ---- 4) conv2 + BN + ReLU ----
    y1_pad_ref[...] = jnp.zeros(y1_pad_ref.shape, jnp.float32)
    y1_pad_ref[pl.ds(1, H), pl.ds(Cout, WCo)] = y1
    y1p = y1_pad_ref[...]
    acc2 = jnp.zeros((H, WCo), jnp.float32)
    for dh in range(3):
        acc2 = acc2 + jnp.dot(y1p[dh:dh + H, :], b2_ref[dh],
                              preferred_element_type=jnp.float32)
    y2 = jnp.maximum(acc2 * s2_ref[...] + t2_ref[...], 0.0)

    # ---- 5) lane-dense store: block (1, H, W*Cout) with 128 lanes ----
    o_ref[...] = y2[None, :, :].astype(o_ref.dtype)


# ----------------------------------------------------------------------------
# Host-side weight packing helpers (tiny, run once per call under jit).
# ----------------------------------------------------------------------------
def _conv_band_matrices(w_src, W):
    """w_src: (Cout, Csrc, 3, 3) PyTorch layout -> (3, (W+2)*Csrc, W*Cout).

    B[dh, (w+dw)*Csrc + ic, w*Cout + oc] = w_src[oc, ic, dh, dw]; zero elsewhere.
    Multiplying a zero-padded, row-packed input row slab (H, (W+2)*Csrc) by
    B[dh] computes the dh tap of a 3x3 'same' conv for a whole output row.
    """
    Co, Cs, KH, KW = w_src.shape
    S = np.zeros((KW, W + 2, W), np.float32)
    for d in range(KW):
        for c in range(W):
            S[d, c + d, c] = 1.0
    B = jnp.einsum("dpw,oihd->hpiwo", jnp.asarray(S), w_src.astype(jnp.float32))
    return B.reshape(KH, (W + 2) * Cs, W * Co)


# ----------------------------------------------------------------------------
# UpConv forward (NCHW in / NCHW out, matching PyTorch).
# ----------------------------------------------------------------------------
def upconv_forward(x_nchw, xcat_nchw, p, eps=1e-5):
    N, Cin_up, Hlow, Wlow = x_nchw.shape
    Cout_up = p["up_w"].shape[1]
    _, Ccat, H, W = xcat_nchw.shape
    Cout = p["c1_w"].shape[0]
    assert H == 2 * Hlow and W == 2 * Wlow
    assert p["c1_w"].shape[1] == Cout_up + Ccat

    # ---- pack inputs into row-packed layouts (lane index = w*C + c) ----
    x_rows = jnp.transpose(x_nchw, (0, 2, 3, 1)).reshape(N, Hlow, Wlow * Cin_up)
    cat_pad = jnp.pad(jnp.transpose(xcat_nchw, (0, 2, 3, 1)),
                      ((0, 0), (1, 1), (1, 1), (0, 0)))
    cat_pad = cat_pad.reshape(N, H + 2, (W + 2) * Ccat)

    # ---- ConvTranspose2d(k=2,s=2) as a block-diagonal (banded) matmul ----
    # W_big[j*Cin + ic, kh*(W*Cout_up) + (2j+kw)*Cout_up + oc] = up_w[ic,oc,kh,kw]
    w_perm = jnp.transpose(p["up_w"], (2, 0, 3, 1))            # (kh, ic, kw, oc)
    eye_w = jnp.eye(Wlow, dtype=jnp.float32)
    w_up_big = jnp.concatenate(
        [jnp.kron(eye_w, w_perm[kh].reshape(Cin_up, 2 * Cout_up))
         for kh in range(2)], axis=1)                          # (Wlow*Cin, 2*W*Cout_up)
    b_up_row = jnp.tile(p["up_b"], 2 * W).reshape(1, 2 * W * Cout_up)

    # ---- conv weights as banded matrices; BN folded into scale/shift rows ----
    B1u = _conv_band_matrices(p["c1_w"][:, :Cout_up], W)       # (3,(W+2)*Cup, W*Cout)
    B1c = _conv_band_matrices(p["c1_w"][:, Cout_up:], W)       # (3,(W+2)*Ccat,W*Cout)
    B2 = _conv_band_matrices(p["c2_w"], W)                     # (3,(W+2)*Cout,W*Cout)

    def fold_bn(cb, g, beta, mean, var):
        s = g / jnp.sqrt(var + eps)
        t = (cb - mean) * s + beta
        return (jnp.tile(s, W).reshape(1, W * Cout),
                jnp.tile(t, W).reshape(1, W * Cout))

    s1, t1 = fold_bn(p["c1_b"], p["c1_g"], p["c1_beta"], p["c1_mean"], p["c1_var"])
    s2, t2 = fold_bn(p["c2_b"], p["c2_g"], p["c2_beta"], p["c2_mean"], p["c2_var"])

    kernel = functools.partial(_upconv_fused_kernel, Hlow=Hlow, H=H, W=W,
                               Cout_up=Cout_up, Cout=Cout)

    out_rows = pl.pallas_call(
        kernel,
        out_shape=jax.ShapeDtypeStruct((N, H, W * Cout), x_nchw.dtype),
        grid=(N,),
        in_specs=[
            pl.BlockSpec((1, Hlow, Wlow * Cin_up), lambda n: (n, 0, 0)),
            pl.BlockSpec((1, H + 2, (W + 2) * Ccat), lambda n: (n, 0, 0)),
            pl.BlockSpec((Wlow * Cin_up, 2 * W * Cout_up), lambda n: (0, 0)),
            pl.BlockSpec((1, 2 * W * Cout_up), lambda n: (0, 0)),
            pl.BlockSpec((3, (W + 2) * Cout_up, W * Cout), lambda n: (0, 0, 0)),
            pl.BlockSpec((3, (W + 2) * Ccat, W * Cout), lambda n: (0, 0, 0)),
            pl.BlockSpec((1, W * Cout), lambda n: (0, 0)),
            pl.BlockSpec((1, W * Cout), lambda n: (0, 0)),
            pl.BlockSpec((3, (W + 2) * Cout, W * Cout), lambda n: (0, 0, 0)),
            pl.BlockSpec((1, W * Cout), lambda n: (0, 0)),
            pl.BlockSpec((1, W * Cout), lambda n: (0, 0)),
        ],
        out_specs=pl.BlockSpec((1, H, W * Cout), lambda n: (n, 0, 0)),
        scratch_shapes=[
            pltpu.VMEM((H + 2, (W + 2) * Cout_up), jnp.float32),   # padded up map
            pltpu.VMEM((H + 2, (W + 2) * Cout), jnp.float32),      # padded conv1 out
        ],
        compiler_params=pltpu.CompilerParams(dimension_semantics=("parallel",)),
    )(x_rows, cat_pad, w_up_big, b_up_row, B1u, B1c, s1, t1, B2, s2, t2)

    out = out_rows.reshape(N, H, W, Cout)
    return jnp.transpose(out, (0, 3, 1, 2))                    # -> NCHW


# ----------------------------------------------------------------------------
# Pure-JAX reference (same math, independent lowering) for a sanity check.
# ----------------------------------------------------------------------------
def _ref_conv_transpose(x, w, b):
    t = jnp.einsum("nhwi,iokl->nhwklo", x, w)
    N, H, W, _, _, Co = t.shape
    t = jnp.transpose(t, (0, 1, 3, 2, 4, 5)).reshape(N, 2 * H, 2 * W, Co)
    return t + b


def _ref_conv_norm_relu(x, cw, cb, g, beta, mean, var, eps=1e-5):
    y = jax.lax.conv_general_dilated(
        x, jnp.transpose(cw, (2, 3, 1, 0)), window_strides=(1, 1),
        padding=((1, 1), (1, 1)), dimension_numbers=("NHWC", "HWIO", "NHWC"))
    y = y + cb
    y = (y - mean) / jnp.sqrt(var + eps) * g + beta
    return jnp.maximum(y, 0.0)


def _ref_forward(x_nchw, xcat_nchw, p):
    x = jnp.transpose(x_nchw, (0, 2, 3, 1))
    xcat = jnp.transpose(xcat_nchw, (0, 2, 3, 1))
    up = _ref_conv_transpose(x, p["up_w"], p["up_b"])
    h = jnp.concatenate([up, xcat], axis=-1)
    h = _ref_conv_norm_relu(h, p["c1_w"], p["c1_b"], p["c1_g"], p["c1_beta"],
                            p["c1_mean"], p["c1_var"])
    h = _ref_conv_norm_relu(h, p["c2_w"], p["c2_b"], p["c2_g"], p["c2_beta"],
                            p["c2_mean"], p["c2_var"])
    return jnp.transpose(h, (0, 3, 1, 2))


if __name__ == "__main__":
    # Module config: UpConv(in_channels=16, out_channels=8,
    #                       in_channels_up=8, out_channels_up=8)
    N = 2
    Cin_up, Cout_up = 8, 8          # ConvTranspose2d channels
    Ccat = 8                        # skip-connection channels
    Cin1, Cout = Cin_up + Ccat, 8   # = 16 after concat
    Hlow, Wlow = 8, 8               # low-res spatial; upsampled to 16x16

    key = jax.random.PRNGKey(0)
    ks = jax.random.split(key, 16)

    params = {
        # ConvTranspose2d weight: (Cin, Cout, 2, 2)
        "up_w": 0.1 * jax.random.normal(ks[0], (Cin_up, Cout_up, 2, 2), jnp.float32),
        "up_b": 0.1 * jax.random.normal(ks[1], (Cout_up,), jnp.float32),
        # conv1: Conv2d(16 -> 8, 3x3) + BN(8)
        "c1_w": 0.1 * jax.random.normal(ks[2], (Cout, Cin1, 3, 3), jnp.float32),
        "c1_b": 0.1 * jax.random.normal(ks[3], (Cout,), jnp.float32),
        "c1_g": 1.0 + 0.1 * jax.random.normal(ks[4], (Cout,), jnp.float32),
        "c1_beta": 0.1 * jax.random.normal(ks[5], (Cout,), jnp.float32),
        "c1_mean": 0.1 * jax.random.normal(ks[6], (Cout,), jnp.float32),
        "c1_var": 0.5 + jax.random.uniform(ks[7], (Cout,), jnp.float32),
        # conv2: Conv2d(8 -> 8, 3x3) + BN(8)
        "c2_w": 0.1 * jax.random.normal(ks[8], (Cout, Cout, 3, 3), jnp.float32),
        "c2_b": 0.1 * jax.random.normal(ks[9], (Cout,), jnp.float32),
        "c2_g": 1.0 + 0.1 * jax.random.normal(ks[10], (Cout,), jnp.float32),
        "c2_beta": 0.1 * jax.random.normal(ks[11], (Cout,), jnp.float32),
        "c2_mean": 0.1 * jax.random.normal(ks[12], (Cout,), jnp.float32),
        "c2_var": 0.5 + jax.random.uniform(ks[13], (Cout,), jnp.float32),
    }

    x = jax.random.normal(ks[14], (N, Cin_up, Hlow, Wlow), jnp.float32)        # NCHW
    x_cat = jax.random.normal(ks[15], (N, Ccat, 2 * Hlow, 2 * Wlow), jnp.float32)

    out = jax.block_until_ready(jax.jit(upconv_forward)(x, x_cat, params))
    ref = jax.block_until_ready(_ref_forward(x, x_cat, params))

    assert out.shape == (N, Cout, 2 * Hlow, 2 * Wlow), out.shape
    err = float(jnp.max(jnp.abs(out - ref)))
    assert err < 1e-4, f"max abs err = {err}"
    print("KERNEL_OK")
</pallas_src>

<mosaic_0001>
module attributes {stable_mosaic.version = 11 : i64} {
  func.func @_upconv_fused_kernel(%arg0: i32, %arg1: memref<1x8x64xf32, #tpu.memory_space<vmem>>, %arg2: memref<1x18x144xf32, #tpu.memory_space<vmem>>, %arg3: memref<64x256xf32, #tpu.memory_space<vmem>>, %arg4: memref<1x256xf32, #tpu.memory_space<vmem>>, %arg5: memref<3x144x128xf32, #tpu.memory_space<vmem>>, %arg6: memref<3x144x128xf32, #tpu.memory_space<vmem>>, %arg7: memref<1x128xf32, #tpu.memory_space<vmem>>, %arg8: memref<1x128xf32, #tpu.memory_space<vmem>>, %arg9: memref<3x144x128xf32, #tpu.memory_space<vmem>>, %arg10: memref<1x128xf32, #tpu.memory_space<vmem>>, %arg11: memref<1x128xf32, #tpu.memory_space<vmem>>, %arg12: memref<1x16x128xf32, #tpu.memory_space<vmem>>, %arg13: memref<18x144xf32, #tpu.memory_space<vmem>>, %arg14: memref<18x144xf32, #tpu.memory_space<vmem>>) attributes {dimension_semantics = [#tpu.dimension_semantics<parallel>], iteration_bounds = array<i64: 2>, scalar_prefetch = 0 : i64, scratch_operands = 2 : i64, tpu.core_type = #tpu.core_type<tc>, window_params = [{transform_indices = @transform_0, window_bounds = array<i64: 1, 8, 64>}, {transform_indices = @transform_1, window_bounds = array<i64: 1, 18, 144>}, {pipeline_mode = #tpu.pipeline_mode<synchronous>, transform_indices = @transform_2, window_bounds = array<i64: 64, 256>}, {pipeline_mode = #tpu.pipeline_mode<synchronous>, transform_indices = @transform_3, window_bounds = array<i64: 1, 256>}, {pipeline_mode = #tpu.pipeline_mode<synchronous>, transform_indices = @transform_4, window_bounds = array<i64: 3, 144, 128>}, {pipeline_mode = #tpu.pipeline_mode<synchronous>, transform_indices = @transform_5, window_bounds = array<i64: 3, 144, 128>}, {pipeline_mode = #tpu.pipeline_mode<synchronous>, transform_indices = @transform_6, window_bounds = array<i64: 1, 128>}, {pipeline_mode = #tpu.pipeline_mode<synchronous>, transform_indices = @transform_7, window_bounds = array<i64: 1, 128>}, {pipeline_mode = #tpu.pipeline_mode<synchronous>, transform_indices = @transform_8, window_bounds = array<i64: 3, 144, 128>}, {pipeline_mode = #tpu.pipeline_mode<synchronous>, transform_indices = @transform_9, window_bounds = array<i64: 1, 128>}, {pipeline_mode = #tpu.pipeline_mode<synchronous>, transform_indices = @transform_10, window_bounds = array<i64: 1, 128>}, {transform_indices = @transform_11, window_bounds = array<i64: 1, 16, 128>}]} {
    %c0 = arith.constant 0 : index
    %c0_0 = arith.constant 0 : index
    %c0_1 = arith.constant 0 : index
    %0 = vector.load %arg1[%c0, %c0_0, %c0_1] : memref<1x8x64xf32, #tpu.memory_space<vmem>>, vector<1x8x64xf32>
    %1 = vector.shape_cast %0 : vector<1x8x64xf32> to vector<8x64xf32>
    %c0_2 = arith.constant 0 : index
    %c0_3 = arith.constant 0 : index
    %2 = vector.load %arg3[%c0_2, %c0_3] : memref<64x256xf32, #tpu.memory_space<vmem>>, vector<64x256xf32>
    %cst = arith.constant dense<0.000000e+00> : vector<8x256xf32>
    %3 = tpu.matmul %1, %2, %cst {dimension_numbers = #tpu.dot_dimension_numbers<[1], [0], [0], [1], [0, 0, 1, 1], [], []>} : vector<8x64xf32>, vector<64x256xf32>, vector<8x256xf32> -> vector<8x256xf32>
    %c0_4 = arith.constant 0 : index
    %c0_5 = arith.constant 0 : index
    %4 = vector.load %arg4[%c0_4, %c0_5] : memref<1x256xf32, #tpu.memory_space<vmem>>, vector<1x256xf32>
    %5 = vector.broadcast %4 : vector<1x256xf32> to vector<8x256xf32>
    %6 = arith.addf %3, %5 : vector<8x256xf32>
    %7 = vector.extract_strided_slice %6 {offsets = [0, 0], sizes = [8, 128], strides = [1, 1]} : vector<8x256xf32> to vector<8x128xf32>
    %8 = vector.extract_strided_slice %6 {offsets = [0, 128], sizes = [8, 128], strides = [1, 1]} : vector<8x256xf32> to vector<8x128xf32>
    %cst_6 = arith.constant 0.000000e+00 : f32
    %9 = vector.broadcast %cst_6 : f32 to vector<18x144xf32>
    %c0_7 = arith.constant 0 : index
    %c0_8 = arith.constant 0 : index
    %10 = vector.load %arg13[%c0_7, %c0_8] : memref<18x144xf32, #tpu.memory_space<vmem>>, vector<18x144xf32>
    tpu.vector_store %arg13[%c0_7, %c0_8], %9 {strides = array<i32>} : memref<18x144xf32, #tpu.memory_space<vmem>>, vector<18x144xf32>,
    %11 = vector.extract_strided_slice %7 {offsets = [0, 0], sizes = [1, 128], strides = [1, 1]} : vector<8x128xf32> to vector<1x128xf32>
    %c1 = arith.constant 1 : index
    %c8 = arith.constant 8 : index
    %12 = vector.load %arg13[%c1, %c8] : memref<18x144xf32, #tpu.memory_space<vmem>>, vector<1x128xf32>
    tpu.vector_store %arg13[%c1, %c8], %11 {strides = array<i32>} : memref<18x144xf32, #tpu.memory_space<vmem>>, vector<1x128xf32>,
    %13 = vector.extract_strided_slice %8 {offsets = [0, 0], sizes = [1, 128], strides = [1, 1]} : vector<8x128xf32> to vector<1x128xf32>
    %c2 = arith.constant 2 : index
    %c8_9 = arith.constant 8 : index
    %14 = vector.load %arg13[%c2, %c8_9] : memref<18x144xf32, #tpu.memory_space<vmem>>, vector<1x128xf32>
    tpu.vector_store %arg13[%c2, %c8_9], %13 {strides = array<i32>} : memref<18x144xf32, #tpu.memory_space<vmem>>, vector<1x128xf32>,
    %15 = vector.extract_strided_slice %7 {offsets = [1, 0], sizes = [1, 128], strides = [1, 1]} : vector<8x128xf32> to vector<1x128xf32>
    %c3 = arith.constant 3 : index
    %c8_10 = arith.constant 8 : index
    %16 = vector.load %arg13[%c3, %c8_10] : memref<18x144xf32, #tpu.memory_space<vmem>>, vector<1x128xf32>
    tpu.vector_store %arg13[%c3, %c8_10], %15 {strides = array<i32>} : memref<18x144xf32, #tpu.memory_space<vmem>>, vector<1x128xf32>,
    %17 = vector.extract_strided_slice %8 {offsets = [1, 0], sizes = [1, 128], strides = [1, 1]} : vector<8x128xf32> to vector<1x128xf32>
    %c4 = arith.constant 4 : index
    %c8_11 = arith.constant 8 : index
    %18 = vector.load %arg13[%c4, %c8_11] : memref<18x144xf32, #tpu.memory_space<vmem>>, vector<1x128xf32>
    tpu.vector_store %arg13[%c4, %c8_11], %17 {strides = array<i32>} : memref<18x144xf32, #tpu.memory_space<vmem>>, vector<1x128xf32>,
    %19 = vector.extract_strided_slice %7 {offsets = [2, 0], sizes = [1, 128], strides = [1, 1]} : vector<8x128xf32> to vector<1x128xf32>
    %c5 = arith.constant 5 : index
    %c8_12 = arith.constant 8 : index
    %20 = vector.load %arg13[%c5, %c8_12] : memref<18x144xf32, #tpu.memory_space<vmem>>, vector<1x128xf32>
    tpu.vector_store %arg13[%c5, %c8_12], %19 {strides = array<i32>} : memref<18x144xf32, #tpu.memory_space<vmem>>, vector<1x128xf32>,
    %21 = vector.extract_strided_slice %8 {offsets = [2, 0], sizes = [1, 128], strides = [1, 1]} : vector<8x128xf32> to vector<1x128xf32>
    %c6 = arith.constant 6 : index
    %c8_13 = arith.constant 8 : index
    %22 = vector.load %arg13[%c6, %c8_13] : memref<18x144xf32, #tpu.memory_space<vmem>>, vector<1x128xf32>
    tpu.vector_store %arg13[%c6, %c8_13], %21 {strides = array<i32>} : memref<18x144xf32, #tpu.memory_space<vmem>>, vector<1x128xf32>,
    %23 = vector.extract_strided_slice %7 {offsets = [3, 0], sizes = [1, 128], strides = [1, 1]} : vector<8x128xf32> to vector<1x128xf32>
    %c7 = arith.constant 7 : index
    %c8_14 = arith.constant 8 : index
    %24 = vector.load %arg13[%c7, %c8_14] : memref<18x144xf32, #tpu.memory_space<vmem>>, vector<1x128xf32>
    tpu.vector_store %arg13[%c7, %c8_14], %23 {strides = array<i32>} : memref<18x144xf32, #tpu.memory_space<vmem>>, vector<1x128xf32>,
    %25 = vector.extract_strided_slice %8 {offsets = [3, 0], sizes = [1, 128], strides = [1, 1]} : vector<8x128xf32> to vector<1x128xf32>
    %c8_15 = arith.constant 8 : index
    %c8_16 = arith.constant 8 : index
    %26 = vector.load %arg13[%c8_15, %c8_16] : memref<18x144xf32, #tpu.memory_space<vmem>>, vector<1x128xf32>
    tpu.vector_store %arg13[%c8_15, %c8_16], %25 {strides = array<i32>} : memref<18x144xf32, #tpu.memory_space<vmem>>, vector<1x128xf32>,
    %27 = vector.extract_strided_slice %7 {offsets = [4, 0], sizes = [1, 128], strides = [1, 1]} : vector<8x128xf32> to vector<1x128xf32>
    %c9 = arith.constant 9 : index
    %c8_17 = arith.constant 8 : index
    %28 = vector.load %arg13[%c9, %c8_17] : memref<18x144xf32, #tpu.memory_space<vmem>>, vector<1x128xf32>
    tpu.vector_store %arg13[%c9, %c8_17], %27 {strides = array<i32>} : memref<18x144xf32, #tpu.memory_space<vmem>>, vector<1x128xf32>,
    %29 = vector.extract_strided_slice %8 {offsets = [4, 0], sizes = [1, 128], strides = [1, 1]} : vector<8x128xf32> to vector<1x128xf32>
    %c10 = arith.constant 10 : index
    %c8_18 = arith.constant 8 : index
    %30 = vector.load %arg13[%c10, %c8_18] : memref<18x144xf32, #tpu.memory_space<vmem>>, vector<1x128xf32>
    tpu.vector_store %arg13[%c10, %c8_18], %29 {strides = array<i32>} : memref<18x144xf32, #tpu.memory_space<vmem>>, vector<1x128xf32>,
    %31 = vector.extract_strided_slice %7 {offsets = [5, 0], sizes = [1, 128], strides = [1, 1]} : vector<8x128xf32> to vector<1x128xf32>
    %c11 = arith.constant 11 : index
    %c8_19 = arith.constant 8 : index
    %32 = vector.load %arg13[%c11, %c8_19] : memref<18x144xf32, #tpu.memory_space<vmem>>, vector<1x128xf32>
    tpu.vector_store %arg13[%c11, %c8_19], %31 {strides = array<i32>} : memref<18x144xf32, #tpu.memory_space<vmem>>, vector<1x128xf32>,
    %33 = vector.extract_strided_slice %8 {offsets = [5, 0], sizes = [1, 128], strides = [1, 1]} : vector<8x128xf32> to vector<1x128xf32>
    %c12 = arith.constant 12 : index
    %c8_20 = arith.constant 8 : index
    %34 = vector.load %arg13[%c12, %c8_20] : memref<18x144xf32, #tpu.memory_space<vmem>>, vector<1x128xf32>
    tpu.vector_store %arg13[%c12, %c8_20], %33 {strides = array<i32>} : memref<18x144xf32, #tpu.memory_space<vmem>>, vector<1x128xf32>,
    %35 = vector.extract_strided_slice %7 {offsets = [6, 0], sizes = [1, 128], strides = [1, 1]} : vector<8x128xf32> to vector<1x128xf32>
    %c13 = arith.constant 13 : index
    %c8_21 = arith.constant 8 : index
    %36 = vector.load %arg13[%c13, %c8_21] : memref<18x144xf32, #tpu.memory_space<vmem>>, vector<1x128xf32>
    tpu.vector_store %arg13[%c13, %c8_21], %35 {strides = array<i32>} : memref<18x144xf32, #tpu.memory_space<vmem>>, vector<1x128xf32>,
    %37 = vector.extract_strided_slice %8 {offsets = [6, 0], sizes = [1, 128], strides = [1, 1]} : vector<8x128xf32> to vector<1x128xf32>
    %c14 = arith.constant 14 : index
    %c8_22 = arith.constant 8 : index
    %38 = vector.load %arg13[%c14, %c8_22] : memref<18x144xf32, #tpu.memory_space<vmem>>, vector<1x128xf32>
    tpu.vector_store %arg13[%c14, %c8_22], %37 {strides = array<i32>} : memref<18x144xf32, #tpu.memory_space<vmem>>, vector<1x128xf32>,
    %39 = vector.extract_strided_slice %7 {offsets = [7, 0], sizes = [1, 128], strides = [1, 1]} : vector<8x128xf32> to vector<1x128xf32>
    %c15 = arith.constant 15 : index
    %c8_23 = arith.constant 8 : index
    %40 = vector.load %arg13[%c15, %c8_23] : memref<18x144xf32, #tpu.memory_space<vmem>>, vector<1x128xf32>
    tpu.vector_store %arg13[%c15, %c8_23], %39 {strides = array<i32>} : memref<18x144xf32, #tpu.memory_space<vmem>>, vector<1x128xf32>,
    %41 = vector.extract_strided_slice %8 {offsets = [7, 0], sizes = [1, 128], strides = [1, 1]} : vector<8x128xf32> to vector<1x128xf32>
    %c16 = arith.constant 16 : index
    %c8_24 = arith.constant 8 : index
    %42 = vector.load %arg13[%c16, %c8_24] : memref<18x144xf32, #tpu.memory_space<vmem>>, vector<1x128xf32>
    tpu.vector_store %arg13[%c16, %c8_24], %41 {strides = array<i32>} : memref<18x144xf32, #tpu.memory_space<vmem>>, vector<1x128xf32>,
    %c0_25 = arith.constant 0 : index
    %c0_26 = arith.constant 0 : index
    %43 = vector.load %arg13[%c0_25, %c0_26] : memref<18x144xf32, #tpu.memory_space<vmem>>, vector<18x144xf32>
    %c0_27 = arith.constant 0 : index
    %c0_28 = arith.constant 0 : index
    %c0_29 = arith.constant 0 : index
    %44 = vector.load %arg2[%c0_27, %c0_28, %c0_29] : memref<1x18x144xf32, #tpu.memory_space<vmem>>, vector<1x18x144xf32>
    %45 = vector.shape_cast %44 : vector<1x18x144xf32> to vector<18x144xf32>
    %cst_30 = arith.constant 0.000000e+00 : f32
    %46 = vector.broadcast %cst_30 : f32 to vector<16x128xf32>
    %47 = vector.extract_strided_slice %43 {offsets = [0, 0], sizes = [16, 144], strides = [1, 1]} : vector<18x144xf32> to vector<16x144xf32>
    %c0_31 = arith.constant 0 : index
    %c0_32 = arith.constant 0 : index
    %c0_33 = arith.constant 0 : index
    %48 = vector.load %arg5[%c0_31, %c0_32, %c0_33] : memref<3x144x128xf32, #tpu.memory_space<vmem>>, vector<1x144x128xf32>
    %49 = vector.shape_cast %48 : vector<1x144x128xf32> to vector<144x128xf32>
    %cst_34 = arith.constant dense<0.000000e+00> : vector<16x128xf32>
    %50 = tpu.matmul %47, %49, %cst_34 {dimension_numbers = #tpu.dot_dimension_numbers<[1], [0], [0], [1], [0, 0, 1, 1], [], []>} : vector<16x144xf32>, vector<144x128xf32>, vector<16x128xf32> -> vector<16x128xf32>
    %51 = arith.addf %46, %50 : vector<16x128xf32>
    %52 = vector.extract_strided_slice %45 {offsets = [0, 0], sizes = [16, 144], strides = [1, 1]} : vector<18x144xf32> to vector<16x144xf32>
    %c0_35 = arith.constant 0 : index
    %c0_36 = arith.constant 0 : index
    %c0_37 = arith.constant 0 : index
    %53 = vector.load %arg6[%c0_35, %c0_36, %c0_37] : memref<3x144x128xf32, #tpu.memory_space<vmem>>, vector<1x144x128xf32>
    %54 = vector.shape_cast %53 : vector<1x144x128xf32> to vector<144x128xf32>
    %cst_38 = arith.constant dense<0.000000e+00> : vector<16x128xf32>
    %55 = tpu.matmul %52, %54, %cst_38 {dimension_numbers = #tpu.dot_dimension_numbers<[1], [0], [0], [1], [0, 0, 1, 1], [], []>} : vector<16x144xf32>, vector<144x128xf32>, vector<16x128xf32> -> vector<16x128xf32>
    %56 = arith.addf %51, %55 : vector<16x128xf32>
    %57 = vector.extract_strided_slice %43 {offsets = [1, 0], sizes = [16, 144], strides = [1, 1]} : vector<18x144xf32> to vector<16x144xf32>
    %c1_39 = arith.constant 1 : index
    %c0_40 = arith.constant 0 : index
    %c0_41 = arith.constant 0 : index
    %58 = vector.load %arg5[%c1_39, %c0_40, %c0_41] : memref<3x144x128xf32, #tpu.memory_space<vmem>>, vector<1x144x128xf32>
    %59 = vector.shape_cast %58 : vector<1x144x128xf32> to vector<144x128xf32>
    %cst_42 = arith.constant dense<0.000000e+00> : vector<16x128xf32>
    %60 = tpu.matmul %57, %59, %cst_42 {dimension_numbers = #tpu.dot_dimension_numbers<[1], [0], [0], [1], [0, 0, 1, 1], [], []>} : vector<16x144xf32>, vector<144x128xf32>, vector<16x128xf32> -> vector<16x128xf32>
    %61 = arith.addf %56, %60 : vector<16x128xf32>
    %62 = vector.extract_strided_slice %45 {offsets = [1, 0], sizes = [16, 144], strides = [1, 1]} : vector<18x144xf32> to vector<16x144xf32>
    %c1_43 = arith.constant 1 : index
    %c0_44 = arith.constant 0 : index
    %c0_45 = arith.constant 0 : index
    %63 = vector.load %arg6[%c1_43, %c0_44, %c0_45] : memref<3x144x128xf32, #tpu.memory_space<vmem>>, vector<1x144x128xf32>
    %64 = vector.shape_cast %63 : vector<1x144x128xf32> to vector<144x128xf32>
    %cst_46 = arith.constant dense<0.000000e+00> : vector<16x128xf32>
    %65 = tpu.matmul %62, %64, %cst_46 {dimension_numbers = #tpu.dot_dimension_numbers<[1], [0], [0], [1], [0, 0, 1, 1], [], []>} : vector<16x144xf32>, vector<144x128xf32>, vector<16x128xf32> -> vector<16x128xf32>
    %66 = arith.addf %61, %65 : vector<16x128xf32>
    %67 = vector.extract_strided_slice %43 {offsets = [2, 0], sizes = [16, 144], strides = [1, 1]} : vector<18x144xf32> to vector<16x144xf32>
    %c2_47 = arith.constant 2 : index
    %c0_48 = arith.constant 0 : index
    %c0_49 = arith.constant 0 : index
    %68 = vector.load %arg5[%c2_47, %c0_48, %c0_49] : memref<3x144x128xf32, #tpu.memory_space<vmem>>, vector<1x144x128xf32>
    %69 = vector.shape_cast %68 : vector<1x144x128xf32> to vector<144x128xf32>
    %cst_50 = arith.constant dense<0.000000e+00> : vector<16x128xf32>
    %70 = tpu.matmul %67, %69, %cst_50 {dimension_numbers = #tpu.dot_dimension_numbers<[1], [0], [0], [1], [0, 0, 1, 1], [], []>} : vector<16x144xf32>, vector<144x128xf32>, vector<16x128xf32> -> vector<16x128xf32>
    %71 = arith.addf %66, %70 : vector<16x128xf32>
    %72 = vector.extract_strided_slice %45 {offsets = [2, 0], sizes = [16, 144], strides = [1, 1]} : vector<18x144xf32> to vector<16x144xf32>
    %c2_51 = arith.constant 2 : index
    %c0_52 = arith.constant 0 : index
    %c0_53 = arith.constant 0 : index
    %73 = vector.load %arg6[%c2_51, %c0_52, %c0_53] : memref<3x144x128xf32, #tpu.memory_space<vmem>>, vector<1x144x128xf32>
    %74 = vector.shape_cast %73 : vector<1x144x128xf32> to vector<144x128xf32>
    %cst_54 = arith.constant dense<0.000000e+00> : vector<16x128xf32>
    %75 = tpu.matmul %72, %74, %cst_54 {dimension_numbers = #tpu.dot_dimension_numbers<[1], [0], [0], [1], [0, 0, 1, 1], [], []>} : vector<16x144xf32>, vector<144x128xf32>, vector<16x128xf32> -> vector<16x128xf32>
    %76 = arith.addf %71, %75 : vector<16x128xf32>
    %c0_55 = arith.constant 0 : index
    %c0_56 = arith.constant 0 : index
    %77 = vector.load %arg7[%c0_55, %c0_56] : memref<1x128xf32, #tpu.memory_space<vmem>>, vector<1x128xf32>
    %78 = vector.broadcast %77 : vector<1x128xf32> to vector<16x128xf32>
    %79 = arith.mulf %76, %78 : vector<16x128xf32>
    %c0_57 = arith.constant 0 : index
    %c0_58 = arith.constant 0 : index
    %80 = vector.load %arg8[%c0_57, %c0_58] : memref<1x128xf32, #tpu.memory_space<vmem>>, vector<1x128xf32>
    %81 = vector.broadcast %80 : vector<1x128xf32> to vector<16x128xf32>
    %82 = arith.addf %79, %81 : vector<16x128xf32>
    %cst_59 = arith.constant 0.000000e+00 : f32
    %83 = vector.broadcast %cst_59 : f32 to vector<16x128xf32>
    %84 = arith.maximumf %82, %83 : vector<16x128xf32>
    %cst_60 = arith.constant 0.000000e+00 : f32
    %85 = vector.broadcast %cst_60 : f32 to vector<18x144xf32>
    %c0_61 = arith.constant 0 : index
    %c0_62 = arith.constant 0 : index
    %86 = vector.load %arg14[%c0_61, %c0_62] : memref<18x144xf32, #tpu.memory_space<vmem>>, vector<18x144xf32>
    tpu.vector_store %arg14[%c0_61, %c0_62], %85 {strides = array<i32>} : memref<18x144xf32, #tpu.memory_space<vmem>>, vector<18x144xf32>,
    %c1_63 = arith.constant 1 : index
    %c8_64 = arith.constant 8 : index
    %87 = vector.load %arg14[%c1_63, %c8_64] : memref<18x144xf32, #tpu.memory_space<vmem>>, vector<16x128xf32>
    tpu.vector_store %arg14[%c1_63, %c8_64], %84 {strides = array<i32>} : memref<18x144xf32, #tpu.memory_space<vmem>>, vector<16x128xf32>,
    %c0_65 = arith.constant 0 : index
    %c0_66 = arith.constant 0 : index
    %88 = vector.load %arg14[%c0_65, %c0_66] : memref<18x144xf32, #tpu.memory_space<vmem>>, vector<18x144xf32>
    %cst_67 = arith.constant 0.000000e+00 : f32
    %89 = vector.broadcast %cst_67 : f32 to vector<16x128xf32>
    %90 = vector.extract_strided_slice %88 {offsets = [0, 0], sizes = [16, 144], strides = [1, 1]} : vector<18x144xf32> to vector<16x144xf32>
    %c0_68 = arith.constant 0 : index
    %c0_69 = arith.constant 0 : index
    %c0_70 = arith.constant 0 : index
    %91 = vector.load %arg9[%c0_68, %c0_69, %c0_70] : memref<3x144x128xf32, #tpu.memory_space<vmem>>, vector<1x144x128xf32>
    %92 = vector.shape_cast %91 : vector<1x144x128xf32> to vector<144x128xf32>
    %cst_71 = arith.constant dense<0.000000e+00> : vector<16x128xf32>
    %93 = tpu.matmul %90, %92, %cst_71 {dimension_numbers = #tpu.dot_dimension_numbers<[1], [0], [0], [1], [0, 0, 1, 1], [], []>} : vector<16x144xf32>, vector<144x128xf32>, vector<16x128xf32> -> vector<16x128xf32>
    %94 = arith.addf %89, %93 : vector<16x128xf32>
    %95 = vector.extract_strided_slice %88 {offsets = [1, 0], sizes = [16, 144], strides = [1, 1]} : vector<18x144xf32> to vector<16x144xf32>
    %c1_72 = arith.constant 1 : index
    %c0_73 = arith.constant 0 : index
    %c0_74 = arith.constant 0 : index
    %96 = vector.load %arg9[%c1_72, %c0_73, %c0_74] : memref<3x144x128xf32, #tpu.memory_space<vmem>>, vector<1x144x128xf32>
    %97 = vector.shape_cast %96 : vector<1x144x128xf32> to vector<144x128xf32>
    %cst_75 = arith.constant dense<0.000000e+00> : vector<16x128xf32>
    %98 = tpu.matmul %95, %97, %cst_75 {dimension_numbers = #tpu.dot_dimension_numbers<[1], [0], [0], [1], [0, 0, 1, 1], [], []>} : vector<16x144xf32>, vector<144x128xf32>, vector<16x128xf32> -> vector<16x128xf32>
    %99 = arith.addf %94, %98 : vector<16x128xf32>
    %100 = vector.extract_strided_slice %88 {offsets = [2, 0], sizes = [16, 144], strides = [1, 1]} : vector<18x144xf32> to vector<16x144xf32>
    %c2_76 = arith.constant 2 : index
    %c0_77 = arith.constant 0 : index
    %c0_78 = arith.constant 0 : index
    %101 = vector.load %arg9[%c2_76, %c0_77, %c0_78] : memref<3x144x128xf32, #tpu.memory_space<vmem>>, vector<1x144x128xf32>
    %102 = vector.shape_cast %101 : vector<1x144x128xf32> to vector<144x128xf32>
    %cst_79 = arith.constant dense<0.000000e+00> : vector<16x128xf32>
    %103 = tpu.matmul %100, %102, %cst_79 {dimension_numbers = #tpu.dot_dimension_numbers<[1], [0], [0], [1], [0, 0, 1, 1], [], []>} : vector<16x144xf32>, vector<144x128xf32>, vector<16x128xf32> -> vector<16x128xf32>
    %104 = arith.addf %99, %103 : vector<16x128xf32>
    %c0_80 = arith.constant 0 : index
    %c0_81 = arith.constant 0 : index
    %105 = vector.load %arg10[%c0_80, %c0_81] : memref<1x128xf32, #tpu.memory_space<vmem>>, vector<1x128xf32>
    %106 = vector.broadcast %105 : vector<1x128xf32> to vector<16x128xf32>
    %107 = arith.mulf %104, %106 : vector<16x128xf32>
    %c0_82 = arith.constant 0 : index
    %c0_83 = arith.constant 0 : index
    %108 = vector.load %arg11[%c0_82, %c0_83] : memref<1x128xf32, #tpu.memory_space<vmem>>, vector<1x128xf32>
    %109 = vector.broadcast %108 : vector<1x128xf32> to vector<16x128xf32>
    %110 = arith.addf %107, %109 : vector<16x128xf32>
    %cst_84 = arith.constant 0.000000e+00 : f32
    %111 = vector.broadcast %cst_84 : f32 to vector<16x128xf32>
    %112 = arith.maximumf %110, %111 : vector<16x128xf32>
    %113 = vector.shape_cast %112 : vector<16x128xf32> to vector<1x16x128xf32>
    %c0_85 = arith.constant 0 : index
    %c0_86 = arith.constant 0 : index
    %c0_87 = arith.constant 0 : index
    %114 = vector.load %arg12[%c0_85, %c0_86, %c0_87] : memref<1x16x128xf32, #tpu.memory_space<vmem>>, vector<1x16x128xf32>
    tpu.vector_store %arg12[%c0_85, %c0_86, %c0_87], %113 {strides = array<i32>} : memref<1x16x128xf32, #tpu.memory_space<vmem>>, vector<1x16x128xf32>,
    return
  }
  func.func @transform_0(%arg0: i32) -> (i32, i32, i32) {
    %c0_i32 = arith.constant 0 : i32
    %c0_i32_0 = arith.constant 0 : i32
    %c0_i32_1 = arith.constant 0 : i32
    return %arg0, %c0_i32, %c0_i32_0 : i32, i32, i32
  }
  func.func @transform_1(%arg0: i32) -> (i32, i32, i32) {
    %c0_i32 = arith.constant 0 : i32
    %c0_i32_0 = arith.constant 0 : i32
    %c0_i32_1 = arith.constant 0 : i32
    return %arg0, %c0_i32, %c0_i32_0 : i32, i32, i32
  }
  func.func @transform_2(%arg0: i32) -> (i32, i32) {
    %c0_i32 = arith.constant 0 : i32
    %c0_i32_0 = arith.constant 0 : i32
    %c0_i32_1 = arith.constant 0 : i32
    return %c0_i32, %c0_i32_0 : i32, i32
  }
  func.func @transform_3(%arg0: i32) -> (i32, i32) {
    %c0_i32 = arith.constant 0 : i32
    %c0_i32_0 = arith.constant 0 : i32
    %c0_i32_1 = arith.constant 0 : i32
    return %c0_i32, %c0_i32_0 : i32, i32
  }
  func.func @transform_4(%arg0: i32) -> (i32, i32, i32) {
    %c0_i32 = arith.constant 0 : i32
    %c0_i32_0 = arith.constant 0 : i32
    %c0_i32_1 = arith.constant 0 : i32
    %c0_i32_2 = arith.constant 0 : i32
    return %c0_i32, %c0_i32_0, %c0_i32_1 : i32, i32, i32
  }
  func.func @transform_5(%arg0: i32) -> (i32, i32, i32) {
    %c0_i32 = arith.constant 0 : i32
    %c0_i32_0 = arith.constant 0 : i32
    %c0_i32_1 = arith.constant 0 : i32
    %c0_i32_2 = arith.constant 0 : i32
    return %c0_i32, %c0_i32_0, %c0_i32_1 : i32, i32, i32
  }
  func.func @transform_6(%arg0: i32) -> (i32, i32) {
    %c0_i32 = arith.constant 0 : i32
    %c0_i32_0 = arith.constant 0 : i32
    %c0_i32_1 = arith.constant 0 : i32
    return %c0_i32, %c0_i32_0 : i32, i32
  }
  func.func @transform_7(%arg0: i32) -> (i32, i32) {
    %c0_i32 = arith.constant 0 : i32
    %c0_i32_0 = arith.constant 0 : i32
    %c0_i32_1 = arith.constant 0 : i32
    return %c0_i32, %c0_i32_0 : i32, i32
  }
  func.func @transform_8(%arg0: i32) -> (i32, i32, i32) {
    %c0_i32 = arith.constant 0 : i32
    %c0_i32_0 = arith.constant 0 : i32
    %c0_i32_1 = arith.constant 0 : i32
    %c0_i32_2 = arith.constant 0 : i32
    return %c0_i32, %c0_i32_0, %c0_i32_1 : i32, i32, i32
  }
  func.func @transform_9(%arg0: i32) -> (i32, i32) {
    %c0_i32 = arith.constant 0 : i32
    %c0_i32_0 = arith.constant 0 : i32
    %c0_i32_1 = arith.constant 0 : i32
    return %c0_i32, %c0_i32_0 : i32, i32
  }
  func.func @transform_10(%arg0: i32) -> (i32, i32) {
    %c0_i32 = arith.constant 0 : i32
    %c0_i32_0 = arith.constant 0 : i32
    %c0_i32_1 = arith.constant 0 : i32
    return %c0_i32, %c0_i32_0 : i32, i32
  }
  func.func @transform_11(%arg0: i32) -> (i32, i32, i32) {
    %c0_i32 = arith.constant 0 : i32
    %c0_i32_0 = arith.constant 0 : i32
    %c0_i32_1 = arith.constant 0 : i32
    return %arg0, %c0_i32, %c0_i32_0 : i32, i32, i32
  }
}

</mosaic_0001>

<bundles_post_ra>
// kernel: mul.20
= control target key start
LH: loop header
LB: loop body
LE: loop exit
PB: predicated region body
PF: predicated region fallthrough
CT: control target
= control target key end

     0   :  { %vm42_vm0 = vcmask 1047556   ;;  %vm44_vm1 = vcmask 64512   ;;  %vm54_vm2 = vcmask 130112   ;;  %s111_s0 = inlined_call_operand.vmem [shape: f32[1,8,2,8], index: 0, kind: input, shape index: {}]   ;;  %s112_s1 = inlined_call_operand.vmem [shape: f32[8,16], index: 1, kind: output, shape index: {}]  }
   0x1   :  { %v62_v0 = vld [vmem:[%s111_s0 + $0xe] sm:$0x3]  ;;  %v63_v1 = vld [vmem:[%s111_s0 + $0xc] sm:$0x3]  ;;  %v64_v2 = vld [vmem:[%s111_s0 + $0xa] sm:$0x3] }
   0x2   :  { %8 = vst [vmem:[#allocation0 + $0x38] sm:$0x3] %v62_v0  ;;  %13 = vst [vmem:[#allocation0 + $0x30] sm:$0x3] %v63_v1  ;;  %v65_v3 = vld [vmem:[%s111_s0 + $0x8] sm:$0x3] }
   0x3   :  { %18 = vst [vmem:[#allocation0 + $0x28] sm:$0x3] %v64_v2  ;;  %v66_v4 = vld [vmem:[%s111_s0 + $0x6] sm:$0x3]  ;;  %v67_v5 = vld [vmem:[%s111_s0 + $0x4] sm:$0x3] }
   0x4   :  { %23 = vst [vmem:[#allocation0 + $0x20] sm:$0x3] %v65_v3  ;;  %28 = vst [vmem:[#allocation0 + $0x18] sm:$0x3] %v66_v4  ;;  %v68_v6 = vld [vmem:[%s111_s0 + $0x2] sm:$0x3] }
   0x5   :  { %33 = vst [vmem:[#allocation0 + $0x10] sm:$0x3] %v67_v5  ;;  %v38_v7 = vld [vmem:[%s111_s0] sm:$0x3]  ;;  %37 = vst [vmem:[#allocation0 + $0x8] sm:$0x3] %v68_v6 }
   0x6   :  { %39 = vst [vmem:[#allocation0] sm:$0x3] %v38_v7  ;;  %s70_s0 = smov 8  }
   0xb   :  { %v41_v8 = vld [vmem:[#allocation0] ss:$8 sm:$0xf0]   ;;  %v49_v9 = vld [vmem:[#allocation0 + $0x1] ss:$8 sm:$0xf0]  }
   0xd   :  { %v40_v10 = vld [vmem:[#allocation0] ss:$8 sm:$0xf]   ;;  %v47_v11 = vld [vmem:[#allocation0 + $0x1] ss:$8 sm:$0xf]  }
   0xe   :  { %v43_v12 = vsel %vm42_vm0, %v41_v8, %v40_v10  ;;  %v51_v13 = vsel %vm42_vm0, %v49_v9, %v47_v11 }
   0xf   :  { %52 = vrot.lane.b32.xlu0 %v51_v13, %s70_s0  ;;  %45 = vst.msk [vmem:[%s112_s1] sm:$0xff] %vm44_vm1, %v43_v12  }
  0x81   :  { %v53_v14 = vpop.permute.xlu0 %52  }
  0x82   :  { %55 = vst.msk [vmem:[%s112_s1] sm:$0xff] %vm54_vm2, %v53_v14  }

// kernel: tile.33
= control target key start
LH: loop header
LB: loop body
LE: loop exit
PB: predicated region body
PF: predicated region fallthrough
CT: control target
= control target key end

     0   :  { %s28_s0 = inlined_call_operand.vmem [shape: f32[8], index: 0, kind: input, shape index: {}]   ;;  %s29_s1 = inlined_call_operand.vmem [shape: f32[16,8], index: 1, kind: output, shape index: {}]  }
   0x1   :  { %v4_v0 = vld [vmem:[%s28_s0] ss:$0 sm:$0xff] }
   0x2   :  { %5 = vst [vmem:[%s29_s1] sm:$0xff] %v4_v0  ;;  %8 = vst [vmem:[%s29_s1 + $0x8] sm:$0xff] %v4_v0 }

// kernel: tile.34
= control target key start
LH: loop header
LB: loop body
LE: loop exit
PB: predicated region body
PF: predicated region fallthrough
CT: control target
= control target key end

     0   :  { %s131_s10 = smov 120   ;;  %s132_s11 = smov 104   ;;  %vm3_vm0 = vcmask 64512   ;;  %vm9_vm1 = vcmask 1048512   ;;  %vm15_vm2 = vcmask 982912   ;;  %vm21_vm3 = vcmask 917312   ;;  %s207_s0 = inlined_call_operand.vmem [shape: f32[16,8], index: 0, kind: input, shape index: {}]   ;;  %s208_s1 = inlined_call_operand.vmem [shape: f32[1,128], index: 1, kind: output, shape index: {}]  }
   0x1   :  { %v101_v0 = vld [vmem:[%s207_s0 + $0xf] sm:$0x1]   ;;  %v103_v1 = vld [vmem:[%s207_s0 + $0xd] sm:$0x1]   ;;  %v102_v2 = vld [vmem:[%s207_s0 + $0xe] sm:$0x1]  }
   0x2   :  { %7 = vrot.lane.b32.xlu0 %v101_v0, %s131_s10  ;;  %19 = vrot.lane.b32.xlu1 %v103_v1, %s132_s11  ;;  %v104_v3 = vld [vmem:[%s207_s0 + $0xc] sm:$0x1]   ;;  %s133_s16 = smov 112   ;;  %s134_s17 = smov 96   ;;  %v105_v4 = vld [vmem:[%s207_s0 + $0xb] sm:$0x1]  }
   0x3   :  { %v106_v5 = vld [vmem:[%s207_s0 + $0xa] sm:$0x1]   ;;  %v2_v6 = vld [vmem:[%s207_s0] sm:$0x1]   ;;  %s135_s24 = smov 88   ;;  %s136_s25 = smov 80  }
   0x4   :  { %4 = vst.msk [vmem:[#allocation0] sm:$0x1] %vm3_vm0, %v2_v6   ;;  %v107_v7 = vld [vmem:[%s207_s0 + $0x9] sm:$0x1]   ;;  %v108_v8 = vld [vmem:[%s207_s0 + $0x8] sm:$0x1]  }
   0x5   :  { %s137_s30 = smov 72   ;;  %s138_s2 = smov 64   ;;  %v109_v9 = vld [vmem:[%s207_s0 + $0x7] sm:$0x1]   ;;  %v110_v10 = vld [vmem:[%s207_s0 + $0x6] sm:$0x1]  }
   0x6   :  { %13 = vrot.lane.b32.xlu0 %v102_v2, %s133_s16  ;;  %25 = vrot.lane.b32.xlu1 %v104_v3, %s134_s17  ;;  %s139_s7 = smov 56   ;;  %s140_s8 = smov 48   ;;  %v111_v11 = vld [vmem:[%s207_s0 + $0x5] sm:$0x1]   ;;  %v112_v12 = vld [vmem:[%s207_s0 + $0x4] sm:$0x1]  }
   0x7   :  { %s141_s13 = smov 40   ;;  %s142_s14 = smov 32   ;;  %v113_v13 = vld [vmem:[%s207_s0 + $0x3] sm:$0x1]   ;;  %v114_v14 = vld [vmem:[%s207_s0 + $0x2] sm:$0x1]  }
   0x8   :  { %s143_s19 = smov 24   ;;  %s144_s20 = smov 16   ;;  %v115_v15 = vld [vmem:[%s207_s0 + $0x1] sm:$0x1]   ;;  %vm27_vm4 = vcmask 851712   ;;  %vm33_vm5 = vcmask 786112  }
   0x9   :  { %s145_s0 = smov 8   ;;  %vm39_vm6 = vcmask 720512   ;;  %vm45_vm7 = vcmask 654912   ;;  %vm51_vm8 = vcmask 589312   ;;  %vm57_vm9 = vcmask 523712  }
   0xa   :  { %31 = vrot.lane.b32.xlu0 %v105_v4, %s135_s24  ;;  %37 = vrot.lane.b32.xlu1 %v106_v5, %s136_s25  ;;  %vm63_vm10 = vcmask 458112   ;;  %vm69_vm11 = vcmask 392512   ;;  %vm75_vm12 = vcmask 326912   ;;  %vm81_vm13 = vcmask 261312  }
   0xb   :  { %vm87_vm14 = vcmask 195712   ;;  %vm93_vm15 = vcmask 130112  }
   0xe   :  { %43 = vrot.lane.b32.xlu0 %v107_v7, %s137_s30  ;;  %49 = vrot.lane.b32.xlu1 %v108_v8, %s138_s2 }
  0x12   :  { %55 = vrot.lane.b32.xlu0 %v109_v9, %s139_s7  ;;  %61 = vrot.lane.b32.xlu1 %v110_v10, %s140_s8 }
  0x16   :  { %67 = vrot.lane.b32.xlu0 %v111_v11, %s141_s13  ;;  %73 = vrot.lane.b32.xlu1 %v112_v12, %s142_s14 }
  0x1a   :  { %79 = vrot.lane.b32.xlu0 %v113_v13, %s143_s19  ;;  %85 = vrot.lane.b32.xlu1 %v114_v14, %s144_s20 }
  0x1e   :  { %91 = vrot.lane.b32.xlu0 %v115_v15, %s145_s0 }
  0x74   :  { %v8_v16 = vpop.permute.xlu0 %7   ;;  %v20_v17 = vpop.permute.xlu1 %19  }
  0x75   :  { %10 = vst.msk [vmem:[#allocation0] sm:$0x1] %vm9_vm1, %v8_v16  }
  0x78   :  { %v14_v18 = vpop.permute.xlu0 %13   ;;  %v26_v19 = vpop.permute.xlu1 %25  }
  0x79   :  { %16 = vst.msk [vmem:[#allocation0] sm:$0x1] %vm15_vm2, %v14_v18  }
  0x7a   :  { %22 = vst.msk [vmem:[#allocation0] sm:$0x1] %vm21_vm3, %v20_v17  }
  0x7b   :  { %28 = vst.msk [vmem:[#allocation0] sm:$0x1] %vm27_vm4, %v26_v19  }
  0x7c   :  { %v32_v20 = vpop.permute.xlu0 %31   ;;  %v38_v21 = vpop.permute.xlu1 %37  }
  0x7d   :  { %34 = vst.msk [vmem:[#allocation0] sm:$0x1] %vm33_vm5, %v32_v20  }
  0x7e   :  { %40 = vst.msk [vmem:[#allocation0] sm:$0x1] %vm39_vm6, %v38_v21  }
  0x80   :  { %v44_v22 = vpop.permute.xlu0 %43   ;;  %v50_v23 = vpop.permute.xlu1 %49  }
  0x81   :  { %46 = vst.msk [vmem:[#allocation0] sm:$0x1] %vm45_vm7, %v44_v22  }
  0x82   :  { %52 = vst.msk [vmem:[#allocation0] sm:$0x1] %vm51_vm8, %v50_v23  }
  0x84   :  { %v56_v24 = vpop.permute.xlu0 %55   ;;  %v62_v25 = vpop.permute.xlu1 %61  }
  0x85   :  { %58 = vst.msk [vmem:[#allocation0] sm:$0x1] %vm57_vm9, %v56_v24  }
  0x86   :  { %64 = vst.msk [vmem:[#allocation0] sm:$0x1] %vm63_vm10, %v62_v25  }
  0x88   :  { %v68_v26 = vpop.permute.xlu0 %67   ;;  %v74_v27 = vpop.permute.xlu1 %73  }
  0x89   :  { %70 = vst.msk [vmem:[#allocation0] sm:$0x1] %vm69_vm11, %v68_v26  }
  0x8a   :  { %76 = vst.msk [vmem:[#allocation0] sm:$0x1] %vm75_vm12, %v74_v27  }
  0x8c   :  { %v80_v28 = vpop.permute.xlu0 %79   ;;  %v86_v29 = vpop.permute.xlu1 %85  }
  0x8d   :  { %82 = vst.msk [vmem:[#allocation0] sm:$0x1] %vm81_vm13, %v80_v28  }
  0x8e   :  { %88 = vst.msk [vmem:[#allocation0] sm:$0x1] %vm87_vm14, %v86_v29  }
  0x90   :  { %v92_v30 = vpop.permute.xlu0 %91  }
  0x91   :  { %94 = vst.msk [vmem:[#allocation0] sm:$0x1] %vm93_vm15, %v92_v30  }
  0x98   :  { %v98_v31 = vld [vmem:[#allocation0] sm:$0x1] }
  0x99   :  { %100 = vst [vmem:[%s208_s1] sm:$0x1] %v98_v31 }

// kernel: tile.28
= control target key start
LH: loop header
LB: loop body
LE: loop exit
PB: predicated region body
PF: predicated region fallthrough
CT: control target
= control target key end

     0   :  { %s40_s0 = inlined_call_operand.vmem [shape: f32[8], index: 0, kind: input, shape index: {}]   ;;  %s41_s1 = inlined_call_operand.vmem [shape: f32[32,8], index: 1, kind: output, shape index: {}]  }
   0x1   :  { %v4_v0 = vld [vmem:[%s40_s0] ss:$0 sm:$0xff] }
   0x2   :  { %5 = vst [vmem:[%s41_s1] sm:$0xff] %v4_v0  ;;  %12 = vst [vmem:[%s41_s1 + $0x8] sm:$0xff] %v4_v0 }
   0x3   :  { %13 = vst [vmem:[%s41_s1 + $0x10] sm:$0xff] %v4_v0  ;;  %14 = vst [vmem:[%s41_s1 + $0x18] sm:$0xff] %v4_v0 }

// kernel: tile.29
= control target key start
LH: loop header
LB: loop body
LE: loop exit
PB: predicated region body
PF: predicated region fallthrough
CT: control target
= control target key end

     0   :  { %s7_s6 = smov 3  ;;  %s21_s9 = smov 3  ;;  %vm4_vm0 = vcmask 64512   ;;  %vm11_vm1 = vcmask 1048512   ;;  %vm18_vm2 = vcmask 982912   ;;  %vm25_vm3 = vcmask 917312   ;;  %s232_s0 = inlined_call_operand.vmem [shape: f32[32,8], index: 0, kind: input, shape index: {}]   ;;  %s233_s1 = inlined_call_operand.vmem [shape: f32[1,256], index: 1, kind: output, shape index: {}]  }
   0x1   :  { %v122_v0 = vld [vmem:[%s232_s0 + $0xf] ss:$16 sm:%s7_s6]   ;;  %s153_s10 = smov 120   ;;  %v124_v1 = vld [vmem:[%s232_s0 + $0xd] ss:$16 sm:%s21_s9]   ;;  %s14_s13 = smov 3 }
   0x2   :  { %9 = vrot.lane.b32.xlu0 %v122_v0, %s153_s10  ;;  %s154_s14 = smov 104   ;;  %v123_v2 = vld [vmem:[%s232_s0 + $0xe] ss:$16 sm:%s14_s13]   ;;  %s28_s17 = smov 3  ;;  %vm32_vm4 = vcmask 851712   ;;  %vm39_vm5 = vcmask 786112  }
   0x3   :  { %23 = vrot.lane.b32.xlu1 %v124_v1, %s154_s14  ;;  %v125_v3 = vld [vmem:[%s232_s0 + $0xc] ss:$16 sm:%s28_s17]   ;;  %s35_s20 = smov 3  ;;  %s42_s21 = smov 3  ;;  %vm46_vm6 = vcmask 720512   ;;  %vm53_vm7 = vcmask 654912  }
   0x4   :  { %s155_s22 = smov 112   ;;  %s156_s23 = smov 96   ;;  %v126_v4 = vld [vmem:[%s232_s0 + $0xb] ss:$16 sm:%s35_s20]   ;;  %v127_v5 = vld [vmem:[%s232_s0 + $0xa] ss:$16 sm:%s42_s21]  }
   0x5   :  { %s49_s28 = smov 3  ;;  %s56_s29 = smov 3  ;;  %vm60_vm8 = vcmask 589312   ;;  %vm67_vm9 = vcmask 523712   ;;  %vm74_vm10 = vcmask 458112   ;;  %vm81_vm11 = vcmask 392512  }
   0x6   :  { %16 = vrot.lane.b32.xlu0 %v123_v2, %s155_s22  ;;  %s157_s30 = smov 88   ;;  %s158_s2 = smov 80   ;;  %v128_v6 = vld [vmem:[%s232_s0 + $0x9] ss:$16 sm:%s49_s28]   ;;  %vm88_vm12 = vcmask 326912   ;;  %vm95_vm13 = vcmask 261312  }
   0x7   :  { %30 = vrot.lane.b32.xlu1 %v125_v3, %s156_s23  ;;  %v129_v7 = vld [vmem:[%s232_s0 + $0x8] ss:$16 sm:%s56_s29]   ;;  %s63_s7 = smov 3  ;;  %s70_s8 = smov 3  ;;  %vm102_vm14 = vcmask 195712   ;;  %vm109_vm15 = vcmask 130112  }
   0x8   :  { %s159_s9 = smov 72   ;;  %s160_s10 = smov 64   ;;  %v130_v8 = vld [vmem:[%s232_s0 + $0x7] ss:$16 sm:%s63_s7]   ;;  %v131_v9 = vld [vmem:[%s232_s0 + $0x6] ss:$16 sm:%s70_s8]  }
   0x9   :  { %s2_s13 = smov 3  ;;  %s77_s16 = smov 3 }
   0xa   :  { %37 = vrot.lane.b32.xlu0 %v126_v4, %s157_s30  ;;  %v3_v10 = vld [vmem:[%s232_s0] ss:$16 sm:%s2_s13]   ;;  %s84_s19 = smov 3  ;;  %s161_s20 = smov 56  }
   0xb   :  { %44 = vrot.lane.b32.xlu1 %v127_v5, %s158_s2  ;;  %5 = vst.msk [vmem:[#allocation0] ss:$8 sm:$0x3] %vm4_vm0, %v3_v10   ;;  %s162_s21 = smov 48   ;;  %v132_v11 = vld [vmem:[%s232_s0 + $0x5] ss:$16 sm:%s77_s16]  }
   0xc   :  { %v133_v12 = vld [vmem:[%s232_s0 + $0x4] ss:$16 sm:%s84_s19]   ;;  %s91_s26 = smov 3  ;;  %s98_s27 = smov 3 }
   0xd   :  { %s163_s28 = smov 40   ;;  %s164_s29 = smov 32   ;;  %v134_v13 = vld [vmem:[%s232_s0 + $0x3] ss:$16 sm:%s91_s26]   ;;  %v135_v14 = vld [vmem:[%s232_s0 + $0x2] ss:$16 sm:%s98_s27]  }
   0xe   :  { %51 = vrot.lane.b32.xlu0 %v128_v6, %s159_s9  ;;  %s105_s5 = smov 3  ;;  %s165_s6 = smov 24  }
   0xf   :  { %58 = vrot.lane.b32.xlu1 %v129_v7, %s160_s10  ;;  %s166_s7 = smov 16   ;;  %v136_v15 = vld [vmem:[%s232_s0 + $0x1] ss:$16 sm:%s105_s5]   ;;  %s167_s0 = smov 8  }
  0x12   :  { %65 = vrot.lane.b32.xlu0 %v130_v8, %s161_s20 }
  0x13   :  { %72 = vrot.lane.b32.xlu1 %v131_v9, %s162_s21 }
  0x16   :  { %79 = vrot.lane.b32.xlu0 %v132_v11, %s163_s28 }
  0x17   :  { %86 = vrot.lane.b32.xlu1 %v133_v12, %s164_s29 }
  0x1a   :  { %93 = vrot.lane.b32.xlu0 %v134_v13, %s165_s6 }
  0x1b   :  { %100 = vrot.lane.b32.xlu1 %v135_v14, %s166_s7 }
  0x1e   :  { %107 = vrot.lane.b32.xlu0 %v136_v15, %s167_s0 }
  0x74   :  { %v10_v16 = vpop.permute.xlu0 %9  }
  0x75   :  { %12 = vst.msk [vmem:[#allocation0] ss:$8 sm:$0x3] %vm11_vm1, %v10_v16   ;;  %v24_v17 = vpop.permute.xlu1 %23  }
  0x78   :  { %v17_v18 = vpop.permute.xlu0 %16  }
  0x79   :  { %19 = vst.msk [vmem:[#allocation0] ss:$8 sm:$0x3] %vm18_vm2, %v17_v18   ;;  %v31_v19 = vpop.permute.xlu1 %30  }
  0x7a   :  { %26 = vst.msk [vmem:[#allocation0] ss:$8 sm:$0x3] %vm25_vm3, %v24_v17  }
  0x7b   :  { %33 = vst.msk [vmem:[#allocation0] ss:$8 sm:$0x3] %vm32_vm4, %v31_v19  }
  0x7c   :  { %v38_v20 = vpop.permute.xlu0 %37  }
  0x7d   :  { %40 = vst.msk [vmem:[#allocation0] ss:$8 sm:$0x3] %vm39_vm5, %v38_v20   ;;  %v45_v21 = vpop.permute.xlu1 %44  }
  0x7e   :  { %47 = vst.msk [vmem:[#allocation0] ss:$8 sm:$0x3] %vm46_vm6, %v45_v21  }
  0x80   :  { %v52_v22 = vpop.permute.xlu0 %51  }
  0x81   :  { %54 = vst.msk [vmem:[#allocation0] ss:$8 sm:$0x3] %vm53_vm7, %v52_v22   ;;  %v59_v23 = vpop.permute.xlu1 %58  }
  0x82   :  { %61 = vst.msk [vmem:[#allocation0] ss:$8 sm:$0x3] %vm60_vm8, %v59_v23  }
  0x84   :  { %v66_v24 = vpop.permute.xlu0 %65  }
  0x85   :  { %68 = vst.msk [vmem:[#allocation0] ss:$8 sm:$0x3] %vm67_vm9, %v66_v24   ;;  %v73_v25 = vpop.permute.xlu1 %72  }
  0x86   :  { %75 = vst.msk [vmem:[#allocation0] ss:$8 sm:$0x3] %vm74_vm10, %v73_v25  }
  0x88   :  { %v80_v26 = vpop.permute.xlu0 %79  }
  0x89   :  { %82 = vst.msk [vmem:[#allocation0] ss:$8 sm:$0x3] %vm81_vm11, %v80_v26   ;;  %v87_v27 = vpop.permute.xlu1 %86  }
  0x8a   :  { %89 = vst.msk [vmem:[#allocation0] ss:$8 sm:$0x3] %vm88_vm12, %v87_v27  }
  0x8c   :  { %v94_v28 = vpop.permute.xlu0 %93  }
  0x8d   :  { %96 = vst.msk [vmem:[#allocation0] ss:$8 sm:$0x3] %vm95_vm13, %v94_v28   ;;  %v101_v29 = vpop.permute.xlu1 %100  }
  0x8e   :  { %103 = vst.msk [vmem:[#allocation0] ss:$8 sm:$0x3] %vm102_vm14, %v101_v29  }
  0x90   :  { %v108_v30 = vpop.permute.xlu0 %107  }
  0x91   :  { %110 = vst.msk [vmem:[#allocation0] ss:$8 sm:$0x3] %vm109_vm15, %v108_v30  }
  0x98   :  { %v114_v31 = vld [vmem:[#allocation0] sm:$0x1]  ;;  %v118_v32 = vld [vmem:[#allocation0 + $0x8] sm:$0x1] }
  0x99   :  { %116 = vst [vmem:[%s233_s1] sm:$0x1] %v114_v31  ;;  %137 = vst [vmem:[%s233_s1 + $0x1] sm:$0x1] %v118_v32 }

// kernel: upconv_forward.1
= control target key start
LH: loop header
LB: loop body
LE: loop exit
PB: predicated region body
PF: predicated region fallthrough
CT: control target
= control target key end

     0   :  { %s2264_s17 = smov 0   ;;  %s3131_s0 = inlined_call_operand.vmem [shape: f32[2,8,64], index: 0, kind: input, shape index: {}]   ;;  %s3132_s1 = inlined_call_operand.vmem [shape: f32[2,18,144], index: 1, kind: input, shape index: {}]   ;;  %s3133_s2 = inlined_call_operand.vmem [shape: f32[64,256], index: 2, kind: input, shape index: {}]   ;;  %s3134_s3 = inlined_call_operand.vmem [shape: f32[1,256], index: 3, kind: input, shape index: {}]   ;;  %s3135_s4 = inlined_call_operand.vmem [shape: f32[3,144,128], index: 4, kind: input, shape index: {}]   ;;  %s3136_s5 = inlined_call_operand.vmem [shape: f32[3,144,128], index: 5, kind: input, shape index: {}]   ;;  %s3137_s6 = inlined_call_operand.vmem [shape: f32[1,128], index: 6, kind: input, shape index: {}]   ;;  %s3138_s7 = inlined_call_operand.vmem [shape: f32[1,128], index: 7, kind: input, shape index: {}]   ;;  %s3139_s8 = inlined_call_operand.vmem [shape: f32[3,144,128], index: 8, kind: input, shape index: {}]   ;;  %s3140_s9 = inlined_call_operand.vmem [shape: f32[1,128], index: 9, kind: input, shape index: {}]   ;;  %s3141_s10 = inlined_call_operand.vmem [shape: f32[1,128], index: 10, kind: input, shape index: {}]   ;;  %s3142_s11 = inlined_call_operand.vmem [shape: f32[2,16,128], index: 11, kind: output, shape index: {}]  }
   0x1 LB: > { %s1753_s18 = sadd.s32 4294967295, %s2199_s17   ;;  %p1757_p0 = scmp.ge.s32.totalorder %s2199_s17, 1  ;;  %s2199_s17 = sphi %s2264_s17, %s21_s17  }
   0x2   : > { %p346_p1 = scmp.lt.s32.totalorder %s2199_s17, 3 }
   0x4   : > { %p347_p2 = pnand %p1757_p0, %p346_p1 }
   0x5   : > { %v406_v0 = vld [vmem:[%s3133_s2 + $0x8] sm:$0xff] (!%p347_p2)  ;;  %v408_v1 = vld [vmem:[%s3133_s2 + $0x18] sm:$0xff] (!%p347_p2)  ;;  %v405_v2 = vld [vmem:[%s3133_s2] sm:$0xff] (!%p347_p2)  ;;  %v2201_v7 = vmov (!%p347_p2), 0.0   ;;  %p390_p3 = scmp.lt.s32.totalorder (!%p347_p2), %s1753_s18, 1  ;;  %vm433_vm0 = vcmask (!%p347_p2), 523264   ;;  %v423_v39 = vlaneseq (!%p347_p2) }
   0x6   : > { %350 = sbr.rel (%p347_p2) target bundleno = 1170 (0x492), region = 64  ;;  %v1896_v3 = vpack.c.bf16 (!%p347_p2), %v408_v1, %v406_v0  ;;  %v407_v4 = vld [vmem:[%s3133_s2 + $0x10] sm:$0xff] (!%p347_p2)  ;;  %v410_v5 = vld [vmem:[%s3133_s2 + $0x28] sm:$0xff] (!%p347_p2)  ;;  %v412_v6 = vld [vmem:[%s3133_s2 + $0x38] sm:$0xff] (!%p347_p2)  ;;  %501 = vmatprep.mubr.f32.mxu0 (!%p347_p2), %v2201_v7  ;;  %508 = vst [vmem:[#allocation2] sm:$0xff] (!%p347_p2), %v2201_v7  ;;  %vm509_vm1 = vcmask (!%p347_p2), 130048  }
   0x7   : > { %511 = vst [vmem:[#allocation2 + $0x10] sm:$0xff] (!%p347_p2), %v2201_v7  ;;  %513 = vst [vmem:[#allocation2 + $0x20] sm:$0x3] (!%p347_p2), %v2201_v7  ;;  %v1898_v8 = vpack.c.bf16 (!%p347_p2), %v407_v4, %v405_v2  ;;  %v1900_v9 = vpack.c.bf16 (!%p347_p2), %v412_v6, %v410_v5  ;;  %v409_v10 = vld [vmem:[%s3133_s2 + $0x20] sm:$0xff] (!%p347_p2)  ;;  %v411_v11 = vld [vmem:[%s3133_s2 + $0x30] sm:$0xff] (!%p347_p2)  ;;  %v2202_v29 = vmov (!%p347_p2), 0.0|0.0  }
   0x8   : > { %1302 = vst [vmem:[#allocation3] sm:$0xff] (!%p347_p2), %v2201_v7  ;;  %1304 = vst [vmem:[#allocation3 + $0x10] sm:$0xff] (!%p347_p2), %v2201_v7  ;;  %v414_v12 = vld [vmem:[%s3133_s2 + $0x48] sm:$0xff] (!%p347_p2)  ;;  %1897 = vmatprep.subr.bf16.mxu0 (!%p347_p2), %v1896_v3  ;;  %v416_v13 = vld [vmem:[%s3133_s2 + $0x58] sm:$0xff] (!%p347_p2)  ;;  %v1902_v14 = vpack.c.bf16 (!%p347_p2), %v411_v11, %v409_v10  ;;  %1939 = vmatprep.subr.bf16.mxu1 (!%p347_p2), %v2202_v29  ;;  %v424_v40 = vshrl.u32 (!%p347_p2), %v423_v39, 7  ;;  %vm514_vm2 = vcmask (!%p347_p2), 123904  }
   0x9   : > { %1306 = vst [vmem:[#allocation3 + $0x20] sm:$0x3] (!%p347_p2), %v2201_v7  ;;  %1899 = vmatpush1.bf16.msra.mxu0 (!%p347_p2), %v1898_v8  ;;  %v1904_v15 = vpack.c.bf16 (!%p347_p2), %v416_v13, %v414_v12  ;;  %v413_v16 = vld [vmem:[%s3133_s2 + $0x40] sm:$0xff] (!%p347_p2)  ;;  %v415_v17 = vld [vmem:[%s3133_s2 + $0x50] sm:$0xff] (!%p347_p2)  ;;  %v418_v18 = vld [vmem:[%s3133_s2 + $0x68] sm:$0xff] (!%p347_p2)  ;;  %vm520_vm3 = vcmask (!%p347_p2), 1040448  }
   0xa   : > { %1901 = vmatprep.subr.bf16.mxu0 (!%p347_p2), %v1900_v9  ;;  %v420_v19 = vld [vmem:[%s3133_s2 + $0x78] sm:$0xff] (!%p347_p2)  ;;  %v1906_v20 = vpack.c.bf16 (!%p347_p2), %v415_v17, %v413_v16  ;;  %v417_v22 = vld [vmem:[%s3133_s2 + $0x60] sm:$0xff] (!%p347_p2)  ;;  %v419_v23 = vld [vmem:[%s3133_s2 + $0x70] sm:$0xff] (!%p347_p2)  ;;  %510 = vst.msk [vmem:[#allocation2 + $0x8] sm:$0xff] (!%p347_p2), %vm509_vm1, %v2201_v7  ;;  %v425_v44 = vsub.s32 (!%p347_p2), 0, %v424_v40  ;;  %v429_v48 = vsub.s32 (!%p347_p2), 1, %v424_v40 }
   0xb   : > { %v1908_v21 = vpack.c.bf16 (!%p347_p2), %v420_v19, %v418_v18  ;;  %v1910_v24 = vpack.c.bf16 (!%p347_p2), %v419_v23, %v417_v22  ;;  %v626_v26 = vld [vmem:[%s3135_s4] sm:$0xff] (!%p347_p2)  ;;  %v627_v27 = vld [vmem:[%s3135_s4 + $0x8] sm:$0xff] (!%p347_p2)  ;;  %v628_v28 = vld [vmem:[%s3135_s4 + $0x10] sm:$0xff] (!%p347_p2)  ;;  %512 = vst.msk [vmem:[#allocation2 + $0x18] sm:$0xff] (!%p347_p2), %vm509_vm1, %v2201_v7  ;;  %vm522_vm4 = vcmask (!%p347_p2), 57344   ;;  %vm847_vm5 = vcmask (!%p347_p2), 1046528  }
   0xc   : > { %v1940_v30 = vpack.c.bf16 (!%p347_p2), %v627_v27, %v626_v26  ;;  %v629_v31 = vld [vmem:[%s3135_s4 + $0x18] sm:$0xff] (!%p347_p2)  ;;  %1303 = vst.msk [vmem:[#allocation3 + $0x8] sm:$0xff] (!%p347_p2), %vm509_vm1, %v2201_v7  ;;  %1305 = vst.msk [vmem:[#allocation3 + $0x18] sm:$0xff] (!%p347_p2), %vm509_vm1, %v2201_v7  ;;  %v630_v33 = vld [vmem:[%s3135_s4 + $0x20] sm:$0xff] (!%p347_p2)  ;;  %vm1076_vm6 = vcmask (!%p347_p2), 1045504   ;;  %vm1310_vm7 = vcmask (!%p347_p2), 1040384  }
   0xd   : > { %s3144_s18 = smov (!%p390_p3, %s1753_s18), 1  ;;  %1903 = vmatpush1.bf16.msra.mxu0 %v1902_v14  ;;  %v1943_v32 = vpack.c.bf16 %v629_v31, %v628_v28  ;;  %v631_v34 = vld [vmem:[%s3135_s4 + $0x28] sm:$0xff]  ;;  %v632_v36 = vld [vmem:[%s3135_s4 + $0x30] sm:$0xff]  ;;  %v633_v37 = vld [vmem:[%s3135_s4 + $0x38] sm:$0xff]  ;;  %515 = vst.msk [vmem:[#allocation2 + $0x28] sm:$0x3] %vm514_vm2, %v2201_v7 }
   0xe   : > { %1905 = vmatprep.subr.bf16.mxu0 %v1904_v15  ;;  %s1758_s15 = sshll.u32 %s3144_s18, 3  ;;  %1941 = vmatpush1.bf16.msra.mxu1 %v1940_v30  ;;  %v1946_v35 = vpack.c.bf16 %v631_v34, %v630_v33  ;;  %v1949_v38 = vpack.c.bf16 %v633_v37, %v632_v36  ;;  %v634_v41 = vld [vmem:[%s3135_s4 + $0x40] sm:$0xff]  ;;  %v635_v42 = vld [vmem:[%s3135_s4 + $0x48] sm:$0xff]  ;;  %v636_v46 = vld [vmem:[%s3135_s4 + $0x50] sm:$0xff]  ;;  %1307 = vst.msk [vmem:[#allocation3 + $0x28] sm:$0x3] %vm514_vm2, %v2201_v7 }
   0xf   : > { %s393_s20 = scalar_lea.vmem %s3131_s0, %s1758_s15  ;;  %1942 = vmatprep.subr.bf16.mxu1 %v2202_v29  ;;  %v1952_v43 = vpack.c.bf16 %v635_v42, %v634_v41  ;;  %v421_v45 = vld [vmem:[%s3134_s3] sm:$0x3]  ;;  %v637_v47 = vld [vmem:[%s3135_s4 + $0x58] sm:$0xff]  ;;  %v639_v52 = vld [vmem:[%s3135_s4 + $0x68] sm:$0xff]  ;;  %s2203_s15 = smov 8   ;;  %vm1323_vm8 = vcmask 1047617  }
  0x10   : > { %v404_v25 = vld [vmem:[%s393_s20] sm:$0xff]  ;;  %v1955_v49 = vpack.c.bf16 %v637_v47, %v636_v46  ;;  %v426_v50 = vrot.slane %v421_v45, %v425_v44  ;;  %v430_v53 = vrot.slane %v421_v45, %v429_v48  ;;  %v640_v60 = vld [vmem:[%s3135_s4 + $0x70] sm:$0xff]  ;;  %v641_v61 = vld [vmem:[%s3135_s4 + $0x78] sm:$0xff]  ;;  %s2181_s26 = smul.u32 48, %s3144_s18  ;;  %vm1325_vm9 = vcmask 64513   ;;  %s1895_s24 = sshll.u32 %s3144_s18, 4 }
  0x11   : > { %1907 = vmatpush1.bf16.msra.mxu0 %v1906_v20  ;;  %v638_v51 = vld [vmem:[%s3135_s4 + $0x60] sm:$0xff]  ;;  %v1961_v62 = vpack.c.bf16 %v641_v61, %v640_v60  ;;  %v643_v0 = vld [vmem:[%s3135_s4 + $0x88] sm:$0xff]  ;;  %v647_v22 = vld [vmem:[%s3136_s5 + $0x18] sm:$0xff]  ;;  %vm1327_vm10 = vcmask 1047616   ;;  %vm1329_vm11 = vcmask 64512  }
  0x12   : > { %1909 = vmatprep.subr.bf16.mxu0 %v1908_v21  ;;  %1944 = vmatpush1.bf16.msra.mxu1 %v1943_v32  ;;  %v1958_v54 = vpack.c.bf16 %v639_v52, %v638_v51  ;;  %v642_v63 = vld [vmem:[%s3135_s4 + $0x80] sm:$0xff]  ;;  %s2435_s29 = scalar_lea.vmem %s3132_s1, %s2181_s26  ;;  %v645_v17 = vld [vmem:[%s3136_s5 + $0x8] sm:$0xff]  ;;  %v646_v21 = vld [vmem:[%s3136_s5 + $0x10] sm:$0xff]  ;;  %s403_s26 = scalar_lea.vmem %s3142_s11, %s1895_s24 }
  0x13   : > { %1945 = vmatprep.subr.bf16.mxu1 %v2202_v29  ;;  %v1964_v2 = vpack.c.bf16 %v643_v0, %v642_v63  ;;  %v2438_v7 = vld [vmem:[%s2435_s29 + $0x8] sm:$0xff]  ;;  %v644_v16 = vld [vmem:[%s3136_s5] sm:$0xff]  ;;  %v650_v32 = vld [vmem:[%s3136_s5 + $0x30] sm:$0xff] }
  0x14   : > { %v1913_v19 = vpack.c.bf16 %v645_v17, %v644_v16  ;;  %v648_v26 = vld [vmem:[%s3136_s5 + $0x20] sm:$0xff]  ;;  %v649_v27 = vld [vmem:[%s3136_s5 + $0x28] sm:$0xff]  ;;  %v651_v33 = vld [vmem:[%s3136_s5 + $0x38] sm:$0xff] }
  0x15   : > { %1911 = vmatpush1.bf16.msra.mxu0 %v1910_v24  ;;  %v1916_v24 = vpack.c.bf16 %v647_v22, %v646_v21  ;;  %v1919_v30 = vpack.c.bf16 %v649_v27, %v648_v26  ;;  %v652_v37 = vld [vmem:[%s3136_s5 + $0x40] sm:$0xff]  ;;  %v1767_v40 = vld [vmem:[%s3135_s4 + $0x90] sm:$0xff]  ;;  %v1768_v41 = vld [vmem:[%s3135_s4 + $0x98] sm:$0xff] }
  0x16   : > { %1912 = vmatprep.subr.bf16.mxu0 %v2202_v29  ;;  %1947 = vmatpush1.bf16.msra.mxu1 %v1946_v35  ;;  %v1922_v35 = vpack.c.bf16 %v651_v33, %v650_v32  ;;  %v1967_v44 = vpack.c.bf16 %v1768_v41, %v1767_v40  ;;  %v1769_v45 = vld [vmem:[%s3135_s4 + $0xa0] sm:$0xff]  ;;  %v654_v46 = vld [vmem:[%s3136_s5 + $0x50] sm:$0xff]  ;;  %v655_v47 = vld [vmem:[%s3136_s5 + $0x58] sm:$0xff] }
  0x17   : > { %1948 = vmatprep.subr.bf16.mxu1 %v2202_v29  ;;  %v1770_v51 = vld [vmem:[%s3135_s4 + $0xa8] sm:$0xff]  ;;  %v1928_v52 = vpack.c.bf16 %v655_v47, %v654_v46  ;;  %v658_v63 = vld [vmem:[%s3136_s5 + $0x70] sm:$0xff]  ;;  %v659_v0 = vld [vmem:[%s3136_s5 + $0x78] sm:$0xff] }
  0x18   : > { %1762 = vmatmul.mubr.msk.f32.vlgmr.msra.gmra.mrb[0].mxu0 %vm433_vm0, %v404_v25  ;;  %v2597_v22 = vld [vmem:[%s2435_s29 + $0x18] sm:$0xff]  ;;  %v1779_v27 = vld [vmem:[%s3135_s4 + $0xf0] sm:$0xff] }
  0x19   : > { %1763 = vmatprep.mubr.msk.f32.mxu0 %vm509_vm1, %v2438_v7  ;;  %1914 = vmatpush1.bf16.msra.mxu0 %v1913_v19 }
  0x1a   : > { %1950 = vmatpush1.bf16.msra.mxu1 %v1949_v38  ;;  %1915 = vmatprep.subr.bf16.mxu0 %v2202_v29  ;;  %v653_v38 = vld [vmem:[%s3136_s5 + $0x48] sm:$0xff] }
  0x1b   : > { %1951 = vmatprep.subr.bf16.mxu1 %v2202_v29  ;;  %v1925_v42 = vpack.c.bf16 %v653_v38, %v652_v37  ;;  %v1783_v38 = vld [vmem:[%s3135_s4 + $0x110] sm:$0xff] }
  0x1d   : > { %1917 = vmatpush1.bf16.msra.mxu0 %v1916_v24 }
  0x1e   : > { %1953 = vmatpush1.bf16.msra.mxu1 %v1952_v43  ;;  %1918 = vmatprep.subr.bf16.mxu0 %v2202_v29 }
  0x1f   : > { %1954 = vmatprep.subr.bf16.mxu1 %v2202_v29 }
  0x21   : > { %1920 = vmatpush1.bf16.msra.mxu0 %v1919_v30  ;;  %v2614_v30 = vld [vmem:[%s2435_s29 + $0x10] sm:$0xff] }
  0x22   : > { %1956 = vmatpush1.bf16.msra.mxu1 %v1955_v49  ;;  %1921 = vmatprep.subr.bf16.mxu0 %v2202_v29 }
  0x23   : > { %1957 = vmatprep.subr.bf16.mxu1 %v2202_v29 }
  0x25   : > { %1923 = vmatpush1.bf16.msra.mxu0 %v1922_v35  ;;  %v1781_v35 = vld [vmem:[%s3135_s4 + $0x100] sm:$0xff] }
  0x26   : > { %1959 = vmatpush1.bf16.msra.mxu1 %v1958_v54  ;;  %1924 = vmatprep.subr.bf16.mxu0 %v2202_v29  ;;  %v1970_v54 = vpack.c.bf16 %v1770_v51, %v1769_v45  ;;  %v1790_v51 = vld [vmem:[%s3136_s5 + $0xa8] sm:$0xff] }
  0x27   : > { %1960 = vmatprep.subr.bf16.mxu1 %v2202_v29 }
  0x29   : > { %1926 = vmatpush1.bf16.msra.mxu0 %v1925_v42  ;;  %v1787_v42 = vld [vmem:[%s3136_s5 + $0x90] sm:$0xff] }
  0x2a   : > { %1962 = vmatpush1.bf16.msra.mxu1 %v1961_v62  ;;  %1927 = vmatprep.subr.bf16.mxu0 %v2202_v29 }
  0x2b   : > { %1963 = vmatprep.subr.bf16.mxu1 %v2202_v29 }
  0x2d   : > { %1929 = vmatpush1.bf16.msra.mxu0 %v1928_v52  ;;  %v967_v52 = vrot.slane %v2438_v7, 1 }
  0x2e   : > { %1965 = vmatpush1.bf16.msra.mxu1 %v1964_v2  ;;  %1930 = vmatprep.subr.bf16.mxu0 %v2202_v29  ;;  %v1773_v2 = vld [vmem:[%s3135_s4 + $0xc0] sm:$0xff] }
  0x2f   : > { %1966 = vmatprep.subr.bf16.mxu1 %v2202_v29 }
  0xeb   : > { %v503_v55 = vpop.f32.mrb[0].mxu0 }
  0xec   : > { %v504_v56 = vadd.f32 %v503_v55, %v426_v50  ;;  %v505_v57 = vpop.f32.mrb[1].mxu0  ;;  %v656_v55 = vld [vmem:[%s3136_s5 + $0x60] sm:$0xff] }
  0xed   : > { %v506_v58 = vadd.f32 %v505_v57, %v430_v53 }
  0xee   : > { %517 = vrot.lane.b32.xlu0 %v504_v56, %s2203_s15  ;;  %v530_v59 = vrot.slane %v504_v56, 1  ;;  %v542_v3 = vrot.slane %v504_v56, 2  ;;  %v554_v5 = vrot.slane %v504_v56, 3  ;;  %v566_v8 = vrot.slane %v504_v56, 4 }
  0xef   : > { %v536_v1 = vrot.slane %v506_v58, 1  ;;  %v548_v4 = vrot.slane %v506_v58, 2  ;;  %v560_v6 = vrot.slane %v506_v58, 3  ;;  %v572_v9 = vrot.slane %v506_v58, 4 }
  0xf0   : > { %531 = vrot.lane.b32.xlu1 %v530_v59, %s2203_s15  ;;  %v578_v10 = vrot.slane %v504_v56, 5  ;;  %v584_v11 = vrot.slane %v506_v58, 5  ;;  %v590_v12 = vrot.slane %v504_v56, 6  ;;  %v596_v13 = vrot.slane %v506_v58, 6  ;;  %v1772_v59 = vld [vmem:[%s3135_s4 + $0xb8] sm:$0xff] }
  0xf1   : > { %v602_v14 = vrot.slane %v504_v56, 7  ;;  %v608_v15 = vrot.slane %v506_v58, 7  ;;  %v657_v56 = vld [vmem:[%s3136_s5 + $0x68] sm:$0xff] }
  0xf2   : > { %525 = vrot.lane.b32.xlu0 %v506_v58, %s2203_s15  ;;  %v1771_v58 = vld [vmem:[%s3135_s4 + $0xb0] sm:$0xff]  ;;  %v1931_v60 = vpack.c.bf16 %v657_v56, %v656_v55 }
  0xf3   : > { %v1973_v62 = vpack.c.bf16 %v1772_v59, %v1771_v58  ;;  %v1792_v58 = vld [vmem:[%s3136_s5 + $0xb8] sm:$0xff] }
  0xf4   : > { %537 = vrot.lane.b32.xlu1 %v536_v1, %s2203_s15  ;;  %1932 = vmatpush1.bf16.msra.mxu0 %v1931_v60 }
  0xf5   : > { %1933 = vmatprep.subr.bf16.mxu0 %v2202_v29 }
  0xf6   : > { %543 = vrot.lane.b32.xlu0 %v542_v3, %s2203_s15  ;;  %v1774_v3 = vld [vmem:[%s3135_s4 + $0xc8] sm:$0xff] }
  0xf8   : > { %549 = vrot.lane.b32.xlu1 %v548_v4, %s2203_s15  ;;  %v1934_v4 = vpack.c.bf16 %v659_v0, %v658_v63  ;;  %v1794_v63 = vld [vmem:[%s3136_s5 + $0xc8] sm:$0xff] }
  0xfa   : > { %555 = vrot.lane.b32.xlu0 %v554_v5, %s2203_s15  ;;  %1935 = vmatpush1.bf16.msra.mxu0 %v1934_v4  ;;  %v1797_v4 = vld [vmem:[%s3136_s5 + $0xe0] sm:$0xff] }
  0xfb   : > { %1936 = vmatprep.subr.bf16.mxu0 %v2202_v29 }
  0xfc   : > { %561 = vrot.lane.b32.xlu1 %v560_v6, %s2203_s15  ;;  %v1976_v6 = vpack.c.bf16 %v1774_v3, %v1773_v2  ;;  %v1796_v2 = vld [vmem:[%s3136_s5 + $0xd8] sm:$0xff] }
  0xfe   : > { %567 = vrot.lane.b32.xlu0 %v566_v8, %s2203_s15  ;;  %v660_v8 = vld [vmem:[%s3136_s5 + $0x80] sm:$0xff] }
 0x100   : > { %573 = vrot.lane.b32.xlu1 %v572_v9, %s2203_s15  ;;  %v661_v9 = vld [vmem:[%s3136_s5 + $0x88] sm:$0xff] }
 0x102   : > { %579 = vrot.lane.b32.xlu0 %v578_v10, %s2203_s15  ;;  %v1775_v10 = vld [vmem:[%s3135_s4 + $0xd0] sm:$0xff] }
 0x104   : > { %585 = vrot.lane.b32.xlu1 %v584_v11, %s2203_s15  ;;  %v1776_v11 = vld [vmem:[%s3135_s4 + $0xd8] sm:$0xff] }
 0x106   : > { %591 = vrot.lane.b32.xlu0 %v590_v12, %s2203_s15  ;;  %v1937_v12 = vpack.c.bf16 %v661_v9, %v660_v8  ;;  %v1799_v8 = vld [vmem:[%s3136_s5 + $0xf0] sm:$0xff]  ;;  %v1800_v9 = vld [vmem:[%s3136_s5 + $0xf8] sm:$0xff] }
 0x108   : > { %597 = vrot.lane.b32.xlu1 %v596_v13, %s2203_s15  ;;  %1938 = vmatpush1.bf16.msra.mxu0 %v1937_v12  ;;  %v1979_v13 = vpack.c.bf16 %v1776_v11, %v1775_v10  ;;  %v2012_v10 = vpack.c.bf16 %v1800_v9, %v1799_v8  ;;  %v1801_v11 = vld [vmem:[%s3136_s5 + $0x100] sm:$0xff]  ;;  %v1802_v12 = vld [vmem:[%s3136_s5 + $0x108] sm:$0xff] }
 0x109   : > { %2074 = vmatprep.subr.bf16.mxu0 %v2202_v29  ;;  %v1831_v9 = vld [vmem:[%s3136_s5 + $0x140] sm:$0xff] }
 0x10a   : > { %603 = vrot.lane.b32.xlu0 %v602_v14, %s2203_s15  ;;  %v1777_v14 = vld [vmem:[%s3135_s4 + $0xe0] sm:$0xff] }
 0x10c   : > { %609 = vrot.lane.b32.xlu1 %v608_v15, %s2203_s15  ;;  %v1778_v15 = vld [vmem:[%s3135_s4 + $0xe8] sm:$0xff] }
 0x10d   : > { %v1982_v26 = vpack.c.bf16 %v1778_v15, %v1777_v14  ;;  %v1803_v14 = vld [vmem:[%s3136_s5 + $0x110] sm:$0xff]  ;;  %v1804_v15 = vld [vmem:[%s3136_s5 + $0x118] sm:$0xff] }
 0x160   : > { %v518_v18 = vpop.permute.xlu0 %517 }
 0x161   : > { %521 = vst.msk [vmem:[#allocation2 + $0x1] sm:$0x1] %vm520_vm3, %v518_v18 }
 0x162   : > { %523 = vst.msk [vmem:[#allocation2 + $0x9] sm:$0x1] %vm522_vm4, %v518_v18  ;;  %v532_v20 = vpop.permute.xlu1 %531  ;;  %v2589_v18 = vld [vmem:[%s2435_s29] sm:$0xff] }
 0x163   : > { %534 = vst.msk [vmem:[#allocation2 + $0x3] sm:$0x1] %vm520_vm3, %v532_v20  ;;  %733 = vmatmul.mubr.f32.vlgmr.msra.gmra.mrb[2].mxu0 %v2589_v18 }
 0x164   : > { %535 = vst.msk [vmem:[#allocation2 + $0xb] sm:$0x1] %vm522_vm4, %v532_v20  ;;  %v526_v23 = vpop.permute.xlu0 %525  ;;  %1764 = vmatprep.mubr.msk.f32.mxu0 %vm509_vm1, %v2597_v22 }
 0x165   : > { %528 = vst.msk [vmem:[#allocation2 + $0x2] sm:$0x1] %vm520_vm3, %v526_v23 }
 0x166   : > { %529 = vst.msk [vmem:[#allocation2 + $0xa] sm:$0x1] %vm522_vm4, %v526_v23  ;;  %v538_v25 = vpop.permute.xlu1 %537 }
 0x167   : > { %540 = vst.msk [vmem:[#allocation2 + $0x4] sm:$0x1] %vm520_vm3, %v538_v25  ;;  %738 = vmatmul.mubr.f32.gmra.mrb[4].mxu0 %v2614_v30 }
 0x168   : > { %541 = vst.msk [vmem:[#allocation2 + $0xc] sm:$0x1] %vm522_vm4, %v538_v25  ;;  %v544_v28 = vpop.permute.xlu0 %543 }
 0x169   : > { %546 = vst.msk [vmem:[#allocation2 + $0x5] sm:$0x1] %vm520_vm3, %v544_v28 }
 0x16a   : > { %547 = vst.msk [vmem:[#allocation2 + $0xd] sm:$0x1] %vm522_vm4, %v544_v28  ;;  %v550_v31 = vpop.permute.xlu1 %549  ;;  %v1780_v28 = vld [vmem:[%s3135_s4 + $0xf8] sm:$0xff] }
 0x16b   : > { %552 = vst.msk [vmem:[#allocation2 + $0x6] sm:$0x1] %vm520_vm3, %v550_v31 }
 0x16c   : > { %553 = vst.msk [vmem:[#allocation2 + $0xe] sm:$0x1] %vm522_vm4, %v550_v31  ;;  %v556_v34 = vpop.permute.xlu0 %555 }
 0x16d   : > { %558 = vst.msk [vmem:[#allocation2 + $0x7] sm:$0x1] %vm520_vm3, %v556_v34 }
 0x16e   : > { %559 = vst.msk [vmem:[#allocation2 + $0xf] sm:$0x1] %vm522_vm4, %v556_v34  ;;  %v562_v36 = vpop.permute.xlu1 %561  ;;  %v1985_v34 = vpack.c.bf16 %v1780_v28, %v1779_v27 }
 0x16f   : > { %564 = vst.msk [vmem:[#allocation2 + $0x10] sm:$0x1] %vm520_vm3, %v562_v36 }
 0x170   : > { %565 = vst.msk [vmem:[#allocation2 + $0x18] sm:$0x1] %vm522_vm4, %v562_v36  ;;  %v568_v39 = vpop.permute.xlu0 %567  ;;  %v1782_v36 = vld [vmem:[%s3135_s4 + $0x108] sm:$0xff] }
 0x171   : > { %570 = vst.msk [vmem:[#allocation2 + $0x11] sm:$0x1] %vm520_vm3, %v568_v39  ;;  %v1988_v37 = vpack.c.bf16 %v1782_v36, %v1781_v35  ;;  %v1809_v35 = vld [vmem:[%s3135_s4 + $0x130] sm:$0xff]  ;;  %v1810_v36 = vld [vmem:[%s3135_s4 + $0x138] sm:$0xff] }
 0x172   : > { %571 = vst.msk [vmem:[#allocation2 + $0x19] sm:$0x1] %vm522_vm4, %v568_v39  ;;  %v574_v43 = vpop.permute.xlu1 %573  ;;  %v1784_v39 = vld [vmem:[%s3135_s4 + $0x118] sm:$0xff] }
 0x173   : > { %576 = vst.msk [vmem:[#allocation2 + $0x12] sm:$0x1] %vm520_vm3, %v574_v43  ;;  %v1991_v40 = vpack.c.bf16 %v1784_v39, %v1783_v38  ;;  %v2024_v39 = vpack.c.bf16 %v1810_v36, %v1809_v35  ;;  %v1189_v36 = vrot.slane %v2589_v18, 2 }
 0x174   : > { %577 = vst.msk [vmem:[#allocation2 + $0x1a] sm:$0x1] %vm522_vm4, %v574_v43  ;;  %v580_v48 = vpop.permute.xlu0 %579  ;;  %v2514_v50 = vld [vmem:[#allocation2] sm:$0xff]  ;;  %v1788_v43 = vld [vmem:[%s3136_s5 + $0x98] sm:$0xff] }
 0x175   : > { %v2512_v49 = vld [vmem:[#allocation2 + $0x8] sm:$0xff]  ;;  %582 = vst.msk [vmem:[#allocation2 + $0x13] sm:$0x1] %vm520_vm3, %v580_v48  ;;  %v1077_v23 = vrot.slane %v2514_v50, 2  ;;  %v848_v46 = vrot.slane %v2514_v50, 1  ;;  %v1994_v47 = vpack.c.bf16 %v1788_v43, %v1787_v42  ;;  %v1811_v42 = vld [vmem:[%s3135_s4 + $0x140] sm:$0xff] }
 0x176   : > { %583 = vst.msk [vmem:[#allocation2 + $0x1b] sm:$0x1] %vm522_vm4, %v580_v48  ;;  %1765 = vmatprep.mubr.msk.f32.mxu1 %vm509_vm1, %v2512_v49  ;;  %v586_v53 = vpop.permute.xlu1 %585  ;;  %v851_v19 = vrot.slane %v2512_v49, 1  ;;  %v1789_v48 = vld [vmem:[%s3136_s5 + $0xa0] sm:$0xff]  ;;  %v1812_v43 = vld [vmem:[%s3135_s4 + $0x148] sm:$0xff] }
 0x177   : > { %814 = vmatmul.mubr.f32.vlgmr.msra.gmra.mrb[0].mxu1 %v2514_v50  ;;  %588 = vst.msk [vmem:[#allocation2 + $0x14] sm:$0x1] %vm520_vm3, %v586_v53  ;;  %v1997_v56 = vpack.c.bf16 %v1790_v51, %v1789_v48  ;;  %v1816_v48 = vld [vmem:[%s3135_s4 + $0x168] sm:$0xff] }
 0x178   : > { %1968 = vmatpush1.bf16.msra.mxu1 %v1967_v44  ;;  %589 = vst.msk [vmem:[#allocation2 + $0x1c] sm:$0x1] %vm522_vm4, %v586_v53  ;;  %v592_v57 = vpop.permute.xlu0 %591  ;;  %v968_v53 = vrot.slane %v2597_v22, 1 }
 0x179   : > { %1969 = vmatprep.subr.bf16.mxu1 %v2202_v29  ;;  %594 = vst.msk [vmem:[#allocation2 + $0x15] sm:$0x1] %vm520_vm3, %v592_v57 }
 0x17a   : > { %595 = vst.msk [vmem:[#allocation2 + $0x1d] sm:$0x1] %vm522_vm4, %v592_v57  ;;  %v598_v61 = vpop.permute.xlu1 %597  ;;  %v1791_v57 = vld [vmem:[%s3136_s5 + $0xb0] sm:$0xff]  ;;  %v969_v59 = vsel %vm847_vm5, %v967_v52, %v968_v53 }
 0x17b   : > { %600 = vst.msk [vmem:[#allocation2 + $0x16] sm:$0x1] %vm520_vm3, %v598_v61  ;;  %v1817_v52 = vld [vmem:[%s3135_s4 + $0x170] sm:$0xff] }
 0x17c   : > { %1971 = vmatpush1.bf16.msra.mxu1 %v1970_v54  ;;  %601 = vst.msk [vmem:[#allocation2 + $0x1e] sm:$0x1] %vm522_vm4, %v598_v61  ;;  %v604_v1 = vpop.permute.xlu0 %603  ;;  %v2000_v61 = vpack.c.bf16 %v1792_v58, %v1791_v57  ;;  %v1821_v57 = vld [vmem:[%s3135_s4 + $0x190] sm:$0xff]  ;;  %v1822_v58 = vld [vmem:[%s3135_s4 + $0x198] sm:$0xff] }
 0x17d   : > { %1972 = vmatprep.subr.bf16.mxu1 %v2202_v29  ;;  %606 = vst.msk [vmem:[#allocation2 + $0x17] sm:$0x1] %vm520_vm3, %v604_v1 }
 0x17e   : > { %607 = vst.msk [vmem:[#allocation2 + $0x1f] sm:$0x1] %vm522_vm4, %v604_v1  ;;  %v610_v5 = vpop.permute.xlu1 %609  ;;  %v1795_v1 = vld [vmem:[%s3136_s5 + $0xd0] sm:$0xff] }
 0x17f   : > { %612 = vst.msk [vmem:[#allocation2 + $0x20] sm:$0x1] %vm520_vm3, %v610_v5  ;;  %v2006_v3 = vpack.c.bf16 %v1796_v2, %v1795_v1 }
 0x180   : > { %1974 = vmatpush1.bf16.msra.mxu1 %v1973_v62  ;;  %613 = vst.msk [vmem:[#allocation2 + $0x28] sm:$0x1] %vm522_vm4, %v610_v5  ;;  %v1793_v62 = vld [vmem:[%s3136_s5 + $0xc0] sm:$0xff]  ;;  %v1798_v5 = vld [vmem:[%s3136_s5 + $0xe8] sm:$0xff] }
 0x181   : > { %1975 = vmatprep.subr.bf16.mxu1 %v2202_v29  ;;  %v2003_v0 = vpack.c.bf16 %v1794_v63, %v1793_v62  ;;  %v1827_v63 = vld [vmem:[%s3136_s5 + $0x120] sm:$0xff] }
 0x184   : > { %1977 = vmatpush1.bf16.msra.mxu1 %v1976_v6  ;;  %v2586_v17 = vld [vmem:[#allocation2 + $0x10] sm:$0xff]  ;;  %v2009_v6 = vpack.c.bf16 %v1798_v5, %v1797_v4  ;;  %v1830_v4 = vld [vmem:[%s3136_s5 + $0x138] sm:$0xff]  ;;  %v1192_v5 = vrot.slane %v2438_v7, 2  ;;  %v1832_v7 = vld [vmem:[%s3136_s5 + $0x148] sm:$0xff] }
 0x185   : > { %v2583_v16 = vld [vmem:[#allocation2 + $0x18] sm:$0xff]  ;;  %1978 = vmatprep.subr.bf16.mxu1 %v2202_v29  ;;  %v1078_v21 = vrot.slane %v2586_v17, 2  ;;  %v849_v44 = vrot.slane %v2586_v17, 1 }
 0x186   : > { %1766 = vmatprep.mubr.msk.f32.mxu1 %vm509_vm1, %v2583_v16  ;;  %v852_v20 = vrot.slane %v2583_v16, 1  ;;  %v618_v24 = vld [vmem:[#allocation2 + $0x20] sm:$0x3] }
 0x187   : > { %819 = vmatmul.mubr.f32.gmra.mrb[2].mxu1 %v2586_v17  ;;  %v2617_v31 = vsel %vm1076_vm6, %v1077_v23, %v1078_v21  ;;  %v1083_v32 = vrot.slane %v618_v24, 2  ;;  %v2637_v41 = vld [vmem:[#allocation2 + $0x28] sm:$0x3]  ;;  %v850_v54 = vsel %vm847_vm5, %v848_v46, %v849_v44  ;;  %v854_v55 = vrot.slane %v618_v24, 1  ;;  %v1807_v23 = vld [vmem:[%s3135_s4 + $0x120] sm:$0xff] }
 0x188   : > { %1980 = vmatpush1.bf16.msra.mxu1 %v1979_v13  ;;  %v853_v25 = vsel %vm847_vm5, %v851_v19, %v852_v20  ;;  %v856_v45 = vrot.slane %v2637_v41, 1  ;;  %v2015_v13 = vpack.c.bf16 %v1802_v12, %v1801_v11  ;;  %v2714_v17 = vld [vmem:[%s2435_s29 + $0x28] sm:$0x3]  ;;  %v2018_v19 = vpack.c.bf16 %v1804_v15, %v1803_v14  ;;  %v1834_v11 = vld [vmem:[%s3136_s5 + $0x158] sm:$0xff]  ;;  %v1837_v15 = vld [vmem:[%s3136_s5 + $0x170] sm:$0xff] }
 0x189   : > { %1785 = vmatprep.mubr.msk.f32.mxu1 %vm509_vm1, %v853_v25  ;;  %1981 = vmatprep.subr.bf16.mxu1 %v2202_v29  ;;  %v2621_v33 = vsel %vm1076_vm6, %v1078_v21, %v1083_v32  ;;  %v855_v60 = vsel %vm847_vm5, %v849_v44, %v854_v55  ;;  %v965_v21 = vrot.slane %v2614_v30, 1  ;;  %v1808_v24 = vld [vmem:[%s3135_s4 + $0x128] sm:$0xff]  ;;  %v972_v25 = vrot.slane %v2714_v17, 1  ;;  %v1819_v55 = vld [vmem:[%s3135_s4 + $0x180] sm:$0xff] }
 0x18a   : > { %v857_v50 = vsel %vm847_vm5, %v852_v20, %v856_v45  ;;  %v964_v20 = vrot.slane %v2589_v18, 1  ;;  %v2021_v28 = vpack.c.bf16 %v1808_v24, %v1807_v23  ;;  %v2027_v44 = vpack.c.bf16 %v1812_v43, %v1811_v42  ;;  %v1814_v45 = vld [vmem:[%s3135_s4 + $0x158] sm:$0xff]  ;;  %v1840_v23 = vld [vmem:[%s3136_s5 + $0x188] sm:$0xff] }
 0x18b   : > { %v1085_v1 = vrot.slane %v2637_v41, 2 }
 0x18c   : > { %1983 = vmatpush1.bf16.msra.mxu1 %v1982_v26  ;;  %v2727_v26 = vld [vmem:[%s2435_s29 + $0x20] sm:$0x3]  ;;  %v966_v27 = vsel %vm847_vm5, %v964_v20, %v965_v21 }
 0x18d   : > { %1984 = vmatprep.subr.bf16.mxu1 %v2202_v29  ;;  %v970_v32 = vrot.slane %v2727_v26, 1 }
 0x18f   : > { %v971_v38 = vsel %vm847_vm5, %v965_v21, %v970_v32  ;;  %v1839_v21 = vld [vmem:[%s3136_s5 + $0x180] sm:$0xff] }
 0x190   : > { %1986 = vmatpush1.bf16.msra.mxu1 %v1985_v34  ;;  %v973_v34 = vsel %vm847_vm5, %v968_v53, %v972_v25  ;;  %v1818_v53 = vld [vmem:[%s3135_s4 + $0x178] sm:$0xff]  ;;  %v2066_v24 = vpack.c.bf16 %v1840_v23, %v1839_v21  ;;  %v1841_v25 = vld [vmem:[%s3136_s5 + $0x190] sm:$0xff]  ;;  %v1843_v32 = vld [vmem:[%s3136_s5 + $0x1a0] sm:$0xff] }
 0x191   : > { %1987 = vmatprep.subr.bf16.mxu1 %v2202_v29 }
 0x194   : > { %1989 = vmatpush1.bf16.msra.mxu1 %v1988_v37  ;;  %v1081_v37 = vrot.slane %v2583_v16, 2 }
 0x195   : > { %1990 = vmatprep.subr.bf16.mxu1 %v2202_v29 }
 0x196   : > { %v1086_v41 = vsel %vm1076_vm6, %v1081_v37, %v1085_v1  ;;  %v1848_v1 = vld [vmem:[%s3138_s7] ss:$0 sm:$0xff] }
 0x198   : > { %1992 = vmatpush1.bf16.msra.mxu1 %v1991_v40  ;;  %v1080_v40 = vrot.slane %v2512_v49, 2  ;;  %v1813_v49 = vld [vmem:[%s3135_s4 + $0x150] sm:$0xff] }
 0x199   : > { %1993 = vmatprep.subr.bf16.mxu1 %v2202_v29  ;;  %v2030_v46 = vpack.c.bf16 %v1814_v45, %v1813_v49  ;;  %v1851_v49 = vld [vmem:[%s3139_s8 + $0xa0] sm:$0xff] }
 0x19a   : > { %v1082_v16 = vsel %vm1076_vm6, %v1080_v40, %v1081_v37  ;;  %v1190_v37 = vrot.slane %v2614_v30, 2  ;;  %v1195_v40 = vrot.slane %v2727_v26, 2  ;;  %v1850_v26 = vld [vmem:[%s3139_s8 + $0x98] sm:$0xff] }
 0x19b   : > { %929 = vmatmul.mubr.f32.vlgmr.msra.gmra.mrb[0].mxu1 %v850_v54  ;;  %v2036_v54 = vpack.c.bf16 %v1818_v53, %v1817_v52  ;;  %v1855_v53 = vld [vmem:[%s3139_s8 + $0xc0] sm:$0xff] }
 0x19c   : > { %1786 = vmatprep.mubr.msk.f32.mxu1 %vm509_vm1, %v857_v50  ;;  %1995 = vmatpush1.bf16.msra.mxu1 %v1994_v47  ;;  %v1815_v47 = vld [vmem:[%s3135_s4 + $0x160] sm:$0xff]  ;;  %v1820_v50 = vld [vmem:[%s3135_s4 + $0x188] sm:$0xff]  ;;  %v1196_v43 = vsel %vm1076_vm6, %v1190_v37, %v1195_v40 }
 0x19d   : > { %1996 = vmatprep.subr.bf16.mxu1 %v2202_v29  ;;  %v2033_v51 = vpack.c.bf16 %v1816_v48, %v1815_v47  ;;  %v1853_v48 = vld [vmem:[%s3139_s8 + $0xb0] sm:$0xff] }
 0x19f   : > { %934 = vmatmul.mubr.f32.gmra.mrb[2].mxu1 %v855_v60  ;;  %v1823_v60 = vld [vmem:[%s3135_s4 + $0x1a0] sm:$0xff] }
 0x1a0   : > { %1998 = vmatpush1.bf16.msra.mxu1 %v1997_v56  ;;  %1805 = vmatprep.mubr.msk.f32.mxu1 %vm509_vm1, %v969_v59  ;;  %v2039_v56 = vpack.c.bf16 %v1820_v50, %v1819_v55  ;;  %v2042_v59 = vpack.c.bf16 %v1822_v58, %v1821_v57  ;;  %v1857_v50 = vld [vmem:[%s3139_s8 + $0xd0] sm:$0xff]  ;;  %v1859_v58 = vld [vmem:[%s3139_s8 + $0xe0] sm:$0xff] }
 0x1a1   : > { %1999 = vmatprep.subr.bf16.mxu1 %v2202_v29 }
 0x1a4   : > { %2001 = vmatpush1.bf16.msra.mxu1 %v2000_v61  ;;  %v1824_v61 = vld [vmem:[%s3135_s4 + $0x1a8] sm:$0xff] }
 0x1a5   : > { %2002 = vmatprep.subr.bf16.mxu1 %v2202_v29  ;;  %v2045_v62 = vpack.c.bf16 %v1824_v61, %v1823_v60 }
 0x1a8   : > { %2004 = vmatpush1.bf16.msra.mxu1 %v2003_v0  ;;  %v1828_v0 = vld [vmem:[%s3136_s5 + $0x128] sm:$0xff] }
 0x1a9   : > { %2005 = vmatprep.subr.bf16.mxu1 %v2202_v29  ;;  %v2048_v2 = vpack.c.bf16 %v1828_v0, %v1827_v63 }
 0x1ac   : > { %2007 = vmatpush1.bf16.msra.mxu1 %v2006_v3  ;;  %v1829_v3 = vld [vmem:[%s3136_s5 + $0x130] sm:$0xff] }
 0x1ad   : > { %2008 = vmatprep.subr.bf16.mxu1 %v2202_v29  ;;  %v2051_v8 = vpack.c.bf16 %v1830_v4, %v1829_v3  ;;  %v1862_v3 = vld [vmem:[%s3139_s8 + $0xf8] sm:$0xff] }
 0x1b0   : > { %2010 = vmatpush1.bf16.msra.mxu1 %v2009_v6  ;;  %v1193_v6 = vrot.slane %v2597_v22, 2 }
 0x1b1   : > { %2011 = vmatprep.subr.bf16.mxu1 %v2202_v29 }
 0x1b2   : > { %v1194_v22 = vsel %vm1076_vm6, %v1192_v5, %v1193_v6 }
 0x1b4   : > { %2013 = vmatpush1.bf16.msra.mxu1 %v2012_v10  ;;  %v1833_v10 = vld [vmem:[%s3136_s5 + $0x150] sm:$0xff] }
 0x1b5   : > { %2014 = vmatprep.subr.bf16.mxu1 %v2202_v29  ;;  %v2057_v12 = vpack.c.bf16 %v1834_v11, %v1833_v10  ;;  %v1865_v10 = vld [vmem:[%s3139_s8 + $0x110] sm:$0xff]  ;;  %v1866_v11 = vld [vmem:[%s3139_s8 + $0x118] sm:$0xff] }
 0x1b8   : > { %2016 = vmatpush1.bf16.msra.mxu1 %v2015_v13  ;;  %v1836_v13 = vld [vmem:[%s3136_s5 + $0x168] sm:$0xff] }
 0x1b9   : > { %2017 = vmatprep.subr.bf16.mxu1 %v2202_v29 }
 0x1bc   : > { %2019 = vmatpush1.bf16.msra.mxu1 %v2018_v19  ;;  %v1838_v19 = vld [vmem:[%s3136_s5 + $0x178] sm:$0xff] }
 0x1bd   : > { %2020 = vmatprep.subr.bf16.mxu1 %v2202_v29  ;;  %v2063_v20 = vpack.c.bf16 %v1838_v19, %v1837_v15  ;;  %v2099_v15 = vpack.c.bf16 %v1866_v11, %v1865_v10  ;;  %v1873_v11 = vld [vmem:[%s3139_s8 + $0x130] sm:$0xff] }
 0x1bf   : > { %1045 = vmatmul.mubr.f32.vlgmr.msra.gmra.mrb[0].mxu1 %v966_v27  ;;  %v1842_v27 = vld [vmem:[%s3136_s5 + $0x198] sm:$0xff] }
 0x1c0   : > { %2022 = vmatpush1.bf16.msra.mxu1 %v2021_v28  ;;  %1806 = vmatprep.mubr.msk.f32.mxu1 %vm509_vm1, %v973_v34  ;;  %v2069_v28 = vpack.c.bf16 %v1842_v27, %v1841_v25  ;;  %v1844_v34 = vld [vmem:[%s3136_s5 + $0x1a8] sm:$0xff] }
 0x1c1   : > { %2023 = vmatprep.subr.bf16.mxu1 %v2202_v29  ;;  %v2072_v35 = vpack.c.bf16 %v1844_v34, %v1843_v32  ;;  %v1339_v32 = vld [vmem:[%s3139_s8] sm:$0xff]  ;;  %v1340_v34 = vld [vmem:[%s3139_s8 + $0x8] sm:$0xff] }
 0x1c3   : > { %1050 = vmatmul.mubr.f32.gmra.mrb[2].mxu1 %v971_v38  ;;  %v1197_v38 = vrot.slane %v2714_v17, 2  ;;  %v1849_v17 = vld [vmem:[%s3139_s8 + $0x90] sm:$0xff] }
 0x1c4   : > { %2025 = vmatpush1.bf16.msra.mxu1 %v2024_v39  ;;  %1825 = vmatprep.mubr.msk.f32.mxu1 %vm509_vm1, %v1082_v16  ;;  %v1191_v39 = vsel %vm1076_vm6, %v1189_v36, %v1190_v37  ;;  %v2075_v45 = vpack.c.bf16 %v1850_v26, %v1849_v17 }
 0x1c5   : > { %2026 = vmatprep.subr.bf16.mxu1 %v2202_v29  ;;  %v1198_v42 = vsel %vm1076_vm6, %v1193_v6, %v1197_v38  ;;  %v1863_v6 = vld [vmem:[%s3139_s8 + $0x100] sm:$0xff] }
 0x1c6   : > { %2076 = vmatpush1.bf16.msra.mxu0 %v2075_v45  ;;  %v1341_v45 = vld [vmem:[%s3139_s8 + $0x10] sm:$0xff] }
 0x1c7   : > { %2077 = vmatprep.subr.bf16.mxu0 %v2202_v29 }
 0x1c8   : > { %2028 = vmatpush1.bf16.msra.mxu1 %v2027_v44 }
 0x1c9   : > { %2029 = vmatprep.subr.bf16.mxu1 %v2202_v29 }
 0x1cc   : > { %2031 = vmatpush1.bf16.msra.mxu1 %v2030_v46  ;;  %v1852_v46 = vld [vmem:[%s3139_s8 + $0xa8] sm:$0xff] }
 0x1cd   : > { %2032 = vmatprep.subr.bf16.mxu1 %v2202_v29  ;;  %v2078_v47 = vpack.c.bf16 %v1852_v46, %v1851_v49  ;;  %v1342_v46 = vld [vmem:[%s3139_s8 + $0x18] sm:$0xff] }
 0x1cf   : > { %2079 = vmatpush1.bf16.msra.mxu0 %v2078_v47 }
 0x1d0   : > { %2034 = vmatpush1.bf16.msra.mxu1 %v2033_v51  ;;  %v1854_v51 = vld [vmem:[%s3139_s8 + $0xb8] sm:$0xff]  ;;  %2080 = vmatprep.subr.bf16.mxu0 %v2202_v29 }
 0x1d1   : > { %2035 = vmatprep.subr.bf16.mxu1 %v2202_v29  ;;  %v2081_v52 = vpack.c.bf16 %v1854_v51, %v1853_v48 }
 0x1d3   : > { %2082 = vmatpush1.bf16.msra.mxu0 %v2081_v52 }
 0x1d4   : > { %2037 = vmatpush1.bf16.msra.mxu1 %v2036_v54  ;;  %v1856_v54 = vld [vmem:[%s3139_s8 + $0xc8] sm:$0xff]  ;;  %2083 = vmatprep.subr.bf16.mxu0 %v2202_v29 }
 0x1d5   : > { %2038 = vmatprep.subr.bf16.mxu1 %v2202_v29  ;;  %v2084_v55 = vpack.c.bf16 %v1856_v54, %v1855_v53  ;;  %v2105_v53 = vpack.c.bf16 %v1342_v46, %v1341_v45  ;;  %v1343_v54 = vld [vmem:[%s3139_s8 + $0x20] sm:$0xff] }
 0x1d7   : > { %2085 = vmatpush1.bf16.msra.mxu0 %v2084_v55  ;;  %v1344_v55 = vld [vmem:[%s3139_s8 + $0x28] sm:$0xff] }
 0x1d8   : > { %2040 = vmatpush1.bf16.msra.mxu1 %v2039_v56  ;;  %v1858_v56 = vld [vmem:[%s3139_s8 + $0xd8] sm:$0xff]  ;;  %2086 = vmatprep.subr.bf16.mxu0 %v2202_v29 }
 0x1d9   : > { %2041 = vmatprep.subr.bf16.mxu1 %v2202_v29  ;;  %v2087_v57 = vpack.c.bf16 %v1858_v56, %v1857_v50  ;;  %v2108_v56 = vpack.c.bf16 %v1344_v55, %v1343_v54 }
 0x1db   : > { %2088 = vmatpush1.bf16.msra.mxu0 %v2087_v57  ;;  %v1345_v57 = vld [vmem:[%s3139_s8 + $0x30] sm:$0xff] }
 0x1dc   : > { %2043 = vmatpush1.bf16.msra.mxu1 %v2042_v59  ;;  %2089 = vmatprep.subr.bf16.mxu0 %v2202_v29  ;;  %v1860_v59 = vld [vmem:[%s3139_s8 + $0xe8] sm:$0xff] }
 0x1dd   : > { %2044 = vmatprep.subr.bf16.mxu1 %v2202_v29  ;;  %v2090_v60 = vpack.c.bf16 %v1860_v59, %v1859_v58  ;;  %v1346_v58 = vld [vmem:[%s3139_s8 + $0x38] sm:$0xff] }
 0x1de   : > { %v2111_v59 = vpack.c.bf16 %v1346_v58, %v1345_v57 }
 0x1df   : > { %2091 = vmatpush1.bf16.msra.mxu0 %v2090_v60  ;;  %v1347_v60 = vld [vmem:[%s3139_s8 + $0x40] sm:$0xff] }
 0x1e0   : > { %2046 = vmatpush1.bf16.msra.mxu1 %v2045_v62  ;;  %v1847_v62 = vld [vmem:[%s3137_s6] ss:$0 sm:$0xff]  ;;  %2092 = vmatprep.subr.bf16.mxu0 %v2202_v29 }
 0x1e1   : > { %2047 = vmatprep.subr.bf16.mxu1 %v2202_v29 }
 0x1e3   : > { %1158 = vmatmul.mubr.f32.vlgmr.msra.gmra.mrb[0].mxu1 %v2617_v31  ;;  %v2054_v31 = vpack.c.bf16 %v1832_v7, %v1831_v9 }
 0x1e4   : > { %1826 = vmatprep.mubr.msk.f32.mxu1 %vm509_vm1, %v1086_v41  ;;  %2049 = vmatpush1.bf16.msra.mxu1 %v2048_v2  ;;  %v1861_v2 = vld [vmem:[%s3139_s8 + $0xf0] sm:$0xff]  ;;  %v1864_v41 = vld [vmem:[%s3139_s8 + $0x108] sm:$0xff] }
 0x1e5   : > { %2050 = vmatprep.subr.bf16.mxu1 %v2202_v29  ;;  %v2093_v5 = vpack.c.bf16 %v1862_v3, %v1861_v2  ;;  %v1351_v2 = vld [vmem:[%s3139_s8 + $0x60] sm:$0xff]  ;;  %v1352_v3 = vld [vmem:[%s3139_s8 + $0x68] sm:$0xff] }
 0x1e7   : > { %1163 = vmatmul.mubr.f32.gmra.mrb[2].mxu1 %v2621_v33  ;;  %v1835_v33 = vld [vmem:[%s3136_s5 + $0x160] sm:$0xff]  ;;  %2094 = vmatpush1.bf16.msra.mxu0 %v2093_v5  ;;  %v1353_v5 = vld [vmem:[%s3139_s8 + $0x70] sm:$0xff] }
 0x1e8   : > { %2052 = vmatpush1.bf16.msra.mxu1 %v2051_v8  ;;  %1845 = vmatprep.mubr.msk.f32.mxu1 %vm509_vm1, %v1194_v22  ;;  %v2060_v14 = vpack.c.bf16 %v1836_v13, %v1835_v33 }
 0x1e9   : > { %2053 = vmatprep.subr.bf16.mxu1 %v2202_v29  ;;  %2095 = vmatprep.subr.bf16.mxu0 %v2202_v29 }
 0x1ec   : > { %2055 = vmatpush1.bf16.msra.mxu1 %v2054_v31  ;;  %v2096_v31 = vpack.c.bf16 %v1864_v41, %v1863_v6  ;;  %v1354_v6 = vld [vmem:[%s3139_s8 + $0x78] sm:$0xff] }
 0x1ed   : > { %2056 = vmatprep.subr.bf16.mxu1 %v2202_v29  ;;  %v2123_v41 = vpack.c.bf16 %v1354_v6, %v1353_v5 }
 0x1ee   : > { %2097 = vmatpush1.bf16.msra.mxu0 %v2096_v31  ;;  %v1872_v31 = vld [vmem:[%s3139_s8 + $0x128] sm:$0xff] }
 0x1ef   : > { %2098 = vmatprep.subr.bf16.mxu0 %v2202_v29 }
 0x1f0   : > { %2058 = vmatpush1.bf16.msra.mxu1 %v2057_v12 }
 0x1f1   : > { %2059 = vmatprep.subr.bf16.mxu1 %v2202_v29 }
 0x1f2   : > { %2100 = vmatpush1.bf16.msra.mxu0 %v2099_v15  ;;  %v1875_v15 = vld [vmem:[%s3139_s8 + $0x140] sm:$0xff] }
 0x1f3   : > { %2101 = vmatprep.subr.bf16.mxu0 %v2202_v29 }
 0x1f4   : > { %2061 = vmatpush1.bf16.msra.mxu1 %v2060_v14 }
 0x1f5   : > { %2062 = vmatprep.subr.bf16.mxu1 %v2202_v29 }
 0x1f8   : > { %2064 = vmatpush1.bf16.msra.mxu1 %v2063_v20 }
 0x1f9   : > { %2065 = vmatprep.subr.bf16.mxu1 %v2202_v29 }
 0x1fc   : > { %2067 = vmatpush1.bf16.msra.mxu1 %v2066_v24 }
 0x1fd   : > { %2068 = vmatprep.subr.bf16.mxu1 %v2202_v29 }
 0x200   : > { %2070 = vmatpush1.bf16.msra.mxu1 %v2069_v28 }
 0x201   : > { %2071 = vmatprep.subr.bf16.mxu1 %v2202_v29 }
 0x204   : > { %2073 = vmatpush1.bf16.msra.mxu1 %v2072_v35 }
 0x207   : > { %1270 = vmatmul.mubr.f32.vlgmr.msra.gmra.mrb[0].mxu1 %v1191_v39 }
 0x208   : > { %1846 = vmatprep.mubr.msk.f32.mxu1 %vm509_vm1, %v1198_v42 }
 0x20b   : > { %1275 = vmatmul.mubr.f32.gmra.mrb[2].mxu1 %v1196_v43 }
 0x236   : > { %v734_v18 = vpop.f32.mrb[2].mxu0 }
 0x237   : > { %v736_v16 = vpop.f32.mrb[3].mxu0 }
 0x23a   : > { %v739_v30 = vpop.f32.mrb[4].mxu0 }
 0x23b   : > { %v741_v44 = vpop.f32.mrb[5].mxu0 }
 0x23c   : > { %v2102_v44 = vpack.c.bf16 %v1340_v34, %v1339_v32  ;;  %v1881_v34 = vld [vmem:[%s3139_s8 + $0x170] sm:$0xff] }
 0x2da   : > { %v1271_v61 = vpop.f32.mrb[0].mxu1 }
 0x2db   : > { %v2155_v63 = vadd.f32 %v1271_v61, %v734_v18  ;;  %v1273_v0 = vpop.f32.mrb[1].mxu1  ;;  %v1348_v61 = vld [vmem:[%s3139_s8 + $0x48] sm:$0xff] }
 0x2dc   : > { %v1350_v0 = vld [vmem:[%s3139_s8 + $0x58] sm:$0xff] }
 0x2dd   : > { %v1289_v4 = vmul.f32 %v2155_v63, %v1847_v62  ;;  %v1349_v63 = vld [vmem:[%s3139_s8 + $0x50] sm:$0xff] }
 0x2de   : > { %v1276_v8 = vpop.f32.mrb[2].mxu1 }
 0x2df   : > { %v1298_v9 = vadd.f32 %v1848_v1, %v1289_v4  ;;  %v2156_v7 = vadd.f32 %v1276_v8, %v739_v30  ;;  %v1278_v22 = vpop.f32.mrb[3].mxu1  ;;  %v2120_v4 = vpack.c.bf16 %v1352_v3, %v1351_v2  ;;  %v1355_v8 = vld [vmem:[%s3139_s8 + $0x80] sm:$0xff] }
 0x2e0   : > { %v1871_v22 = vld [vmem:[%s3139_s8 + $0x120] sm:$0xff] }
 0x2e1   : > { %v1290_v12 = vmul.f32 %v2156_v7, %v1847_v62  ;;  %v1300_v33 = vmax.f32 %v1298_v9, 0.0  ;;  %v2114_v62 = vpack.c.bf16 %v1348_v61, %v1347_v60  ;;  %v1356_v9 = vld [vmem:[%s3139_s8 + $0x88] sm:$0xff]  ;;  %v2129_v10 = vpack.c.bf16 %v1872_v31, %v1871_v22 }
 0x2e2   : > { %v2126_v7 = vpack.c.bf16 %v1356_v9, %v1355_v8 }
 0x2e3   : > { %v1299_v13 = vadd.f32 %v1848_v1, %v1290_v12  ;;  %v1311_v14 = vrot.slane %v1300_v33, 7  ;;  %v2117_v1 = vpack.c.bf16 %v1350_v0, %v1349_v63  ;;  %v1874_v12 = vld [vmem:[%s3139_s8 + $0x138] sm:$0xff] }
 0x2e5   : > { %1314 = vrot.lane.b32.xlu0 %v1311_v14, %s2203_s15  ;;  %v1301_v19 = vmax.f32 %v1299_v13, 0.0  ;;  %v2132_v13 = vpack.c.bf16 %v1874_v12, %v1873_v11 }
 0x2e7   : > { %v1312_v20 = vrot.slane %v1301_v19, 7  ;;  %v1876_v19 = vld [vmem:[%s3139_s8 + $0x148] sm:$0xff] }
 0x2e9   : > { %1318 = vrot.lane.b32.xlu0 %v1312_v20, %s2203_s15  ;;  %v1313_v21 = vsel %vm1310_vm7, %v1311_v14, %v1312_v20 }
 0x2ea   : > { %1316 = vrot.lane.b32.xlu1 %v1313_v21, %s2203_s15  ;;  %v2135_v21 = vpack.c.bf16 %v1876_v19, %v1875_v15 }
 0x357   : > { %v1315_v23 = vpop.permute.xlu0 %1314 }
 0x358   : > { %1324 = vst.msk [vmem:[#allocation3] sm:$0xfe] %vm1323_vm8, %v1315_v23 }
 0x359   : > { %1326 = vst.msk [vmem:[#allocation3 + $0x8] sm:$0xfe] %vm1325_vm9, %v1315_v23  ;;  %v1877_v23 = vld [vmem:[%s3139_s8 + $0x150] sm:$0xff] }
 0x35b   : > { %v1319_v24 = vpop.permute.xlu0 %1318 }
 0x35c   : > { %1331 = vst.msk [vmem:[#allocation3 + $0x20] sm:$0x1] %vm520_vm3, %v1319_v24  ;;  %v1317_v25 = vpop.permute.xlu1 %1316 }
 0x35d   : > { %1332 = vst.msk [vmem:[#allocation3 + $0x28] sm:$0x1] %vm522_vm4, %v1319_v24  ;;  %v1878_v24 = vld [vmem:[%s3139_s8 + $0x158] sm:$0xff] }
 0x35e   : > { %1328 = vst.msk [vmem:[#allocation3 + $0x10] sm:$0xff] %vm1327_vm10, %v1317_v25 }
 0x35f   : > { %1330 = vst.msk [vmem:[#allocation3 + $0x18] sm:$0xff] %vm1329_vm11, %v1317_v25  ;;  %v2951_v28 = vld [vmem:[#allocation3] sm:$0xff]  ;;  %v2138_v25 = vpack.c.bf16 %v1878_v24, %v1877_v23 }
 0x360   : > { %v2949_v27 = vld [vmem:[#allocation3 + $0x8] sm:$0xff]  ;;  %v1382_v40 = vrot.slane %v2951_v28, 1  ;;  %v1571_v17 = vrot.slane %v2951_v28, 2 }
 0x361   : > { %v1385_v38 = vrot.slane %v2949_v27, 1  ;;  %v1574_v14 = vrot.slane %v2949_v27, 2 }
 0x363   : > { %v1337_v36 = vld [vmem:[#allocation3 + $0x20] sm:$0x3] }
 0x364   : > { %v2959_v35 = vld [vmem:[#allocation3 + $0x28] sm:$0x3]  ;;  %v1577_v42 = vrot.slane %v1337_v36, 2  ;;  %v1388_v47 = vrot.slane %v1337_v36, 1 }
 0x365   : > { %v2964_v39 = vld [vmem:[#allocation3 + $0x10] sm:$0xff]  ;;  %v1390_v16 = vrot.slane %v2959_v35, 1  ;;  %v1882_v36 = vld [vmem:[%s3139_s8 + $0x178] sm:$0xff] }
 0x366   : > { %v2961_v37 = vld [vmem:[#allocation3 + $0x18] sm:$0xff]  ;;  %v1383_v18 = vrot.slane %v2964_v39, 1  ;;  %v1572_v30 = vrot.slane %v2964_v39, 2 }
 0x367   : > { %v1386_v43 = vrot.slane %v2961_v37, 1  ;;  %v1575_v33 = vrot.slane %v2961_v37, 2 }
 0x368   : > { %v1384_v49 = vsel %vm847_vm5, %v1382_v40, %v1383_v18  ;;  %v2982_v48 = vsel %vm1076_vm6, %v1571_v17, %v1572_v30  ;;  %v2985_v51 = vsel %vm1076_vm6, %v1572_v30, %v1577_v42  ;;  %v1389_v50 = vsel %vm847_vm5, %v1383_v18, %v1388_v47  ;;  %v1885_v42 = vld [vmem:[%s3139_s8 + $0x190] sm:$0xff]  ;;  %v1888_v30 = vld [vmem:[%s3139_s8 + $0x1a8] sm:$0xff] }
 0x369   : > { %v1387_v26 = vsel %vm847_vm5, %v1385_v38, %v1386_v43  ;;  %v1391_v52 = vsel %vm847_vm5, %v1386_v43, %v1390_v16  ;;  %v1576_v20 = vsel %vm1076_vm6, %v1574_v14, %v1575_v33  ;;  %v1883_v38 = vld [vmem:[%s3139_s8 + $0x180] sm:$0xff]  ;;  %v1886_v43 = vld [vmem:[%s3139_s8 + $0x198] sm:$0xff]  ;;  %v1579_v17 = vrot.slane %v2959_v35, 2 }
 0x36a   : > { %1867 = vmatprep.mubr.msk.f32.mxu0 %vm509_vm1, %v1387_v26  ;;  %v2150_v18 = vpack.c.bf16 %v1886_v43, %v1885_v42  ;;  %v1887_v16 = vld [vmem:[%s3139_s8 + $0x1a0] sm:$0xff] }
 0x36b   : > { %1463 = vmatmul.mubr.f32.vlgmr.msra.gmra.mrb[6].mxu0 %v1384_v49  ;;  %v1580_v26 = vsel %vm1076_vm6, %v1575_v33, %v1579_v17  ;;  %v1891_v49 = vld [vmem:[%s3140_s9] ss:$0 sm:$0xff] }
 0x36c   : > { %2103 = vmatpush1.bf16.msra.mxu0 %v2102_v44  ;;  %1868 = vmatprep.mubr.msk.f32.mxu0 %vm509_vm1, %v1391_v52  ;;  %v2153_v44 = vpack.c.bf16 %v1888_v30, %v1887_v16 }
 0x36d   : > { %2104 = vmatprep.subr.bf16.mxu0 %v2202_v29 }
 0x36f   : > { %1468 = vmatmul.mubr.f32.gmra.mrb[8].mxu0 %v1389_v50 }
 0x370   : > { %2106 = vmatpush1.bf16.msra.mxu0 %v2105_v53  ;;  %1869 = vmatprep.mubr.msk.f32.mxu0 %vm509_vm1, %v2949_v27  ;;  %v1879_v27 = vld [vmem:[%s3139_s8 + $0x160] sm:$0xff] }
 0x371   : > { %2107 = vmatprep.subr.bf16.mxu0 %v2202_v29 }
 0x374   : > { %2109 = vmatpush1.bf16.msra.mxu0 %v2108_v56 }
 0x375   : > { %2110 = vmatprep.subr.bf16.mxu0 %v2202_v29 }
 0x378   : > { %2112 = vmatpush1.bf16.msra.mxu0 %v2111_v59 }
 0x379   : > { %2113 = vmatprep.subr.bf16.mxu0 %v2202_v29 }
 0x37c   : > { %2115 = vmatpush1.bf16.msra.mxu0 %v2114_v62 }
 0x37d   : > { %2116 = vmatprep.subr.bf16.mxu0 %v2202_v29 }
 0x380   : > { %2118 = vmatpush1.bf16.msra.mxu0 %v2117_v1 }
 0x381   : > { %2119 = vmatprep.subr.bf16.mxu0 %v2202_v29 }
 0x384   : > { %2121 = vmatpush1.bf16.msra.mxu0 %v2120_v4 }
 0x385   : > { %2122 = vmatprep.subr.bf16.mxu0 %v2202_v29 }
 0x388   : > { %2124 = vmatpush1.bf16.msra.mxu0 %v2123_v41 }
 0x389   : > { %2125 = vmatprep.subr.bf16.mxu0 %v2202_v29 }
 0x38c   : > { %2127 = vmatpush1.bf16.msra.mxu0 %v2126_v7 }
 0x38d   : > { %2128 = vmatprep.subr.bf16.mxu0 %v2202_v29 }
 0x38f   : > { %1542 = vmatmul.mubr.f32.vlgmr.msra.gmra.mrb[6].mxu0 %v2951_v28  ;;  %v1880_v28 = vld [vmem:[%s3139_s8 + $0x168] sm:$0xff] }
 0x390   : > { %1870 = vmatprep.mubr.msk.f32.mxu0 %vm509_vm1, %v2961_v37  ;;  %2130 = vmatpush1.bf16.msra.mxu0 %v2129_v10  ;;  %v2141_v32 = vpack.c.bf16 %v1880_v28, %v1879_v27  ;;  %v2144_v37 = vpack.c.bf16 %v1882_v36, %v1881_v34 }
 0x391   : > { %2131 = vmatprep.subr.bf16.mxu0 %v2202_v29 }
 0x393   : > { %1547 = vmatmul.mubr.f32.gmra.mrb[8].mxu0 %v2964_v39  ;;  %v1884_v39 = vld [vmem:[%s3139_s8 + $0x188] sm:$0xff] }
 0x394   : > { %2133 = vmatpush1.bf16.msra.mxu0 %v2132_v13  ;;  %1889 = vmatprep.mubr.msk.f32.mxu0 %vm509_vm1, %v1576_v20  ;;  %v2147_v40 = vpack.c.bf16 %v1884_v39, %v1883_v38 }
 0x395   : > { %2134 = vmatprep.subr.bf16.mxu0 %v2202_v29 }
 0x398   : > { %2136 = vmatpush1.bf16.msra.mxu0 %v2135_v21 }
 0x399   : > { %2137 = vmatprep.subr.bf16.mxu0 %v2202_v29 }
 0x39c   : > { %2139 = vmatpush1.bf16.msra.mxu0 %v2138_v25 }
 0x39d   : > { %2140 = vmatprep.subr.bf16.mxu0 %v2202_v29 }
 0x3a0   : > { %2142 = vmatpush1.bf16.msra.mxu0 %v2141_v32 }
 0x3a1   : > { %2143 = vmatprep.subr.bf16.mxu0 %v2202_v29 }
 0x3a4   : > { %2145 = vmatpush1.bf16.msra.mxu0 %v2144_v37 }
 0x3a5   : > { %2146 = vmatprep.subr.bf16.mxu0 %v2202_v29 }
 0x3a8   : > { %2148 = vmatpush1.bf16.msra.mxu0 %v2147_v40 }
 0x3a9   : > { %2149 = vmatprep.subr.bf16.mxu0 %v2202_v29 }
 0x3ac   : > { %2151 = vmatpush1.bf16.msra.mxu0 %v2150_v18 }
 0x3ad   : > { %2152 = vmatprep.subr.bf16.mxu0 %v2202_v29  ;;  %v1892_v29 = vld [vmem:[%s3141_s10] ss:$0 sm:$0xff] }
 0x3b0   : > { %2154 = vmatpush1.bf16.msra.mxu0 %v2153_v44 }
 0x3b3   : > { %1652 = vmatmul.mubr.f32.vlgmr.msra.gmra.mrb[6].mxu0 %v2982_v48 }
 0x3b4   : > { %1890 = vmatprep.mubr.msk.f32.mxu0 %vm509_vm1, %v1580_v26 }
 0x3b7   : > { %1657 = vmatmul.mubr.f32.gmra.mrb[8].mxu0 %v2985_v51 }
 0x486   : > { %v1653_v45 = vpop.f32.mrb[6].mxu0 }
 0x487   : > { %v1671_v35 = vmul.f32 %v1891_v49, %v1653_v45  ;;  %v1655_v46 = vpop.f32.mrb[7].mxu0 }
 0x489   : > { %v1680_v47 = vadd.f32 %v1892_v29, %v1671_v35 }
 0x48a   : > { %v1658_v48 = vpop.f32.mrb[8].mxu0 }
 0x48b   : > { %v1682_v52 = vmax.f32 %v1680_v47, 0.0  ;;  %v1672_v51 = vmul.f32 %v1891_v49, %v1658_v48  ;;  %v1660_v53 = vpop.f32.mrb[9].mxu0 }
 0x48d   : > { %1684 = vst [vmem:[%s403_s26] sm:$0xff] %v1682_v52  ;;  %v1681_v54 = vadd.f32 %v1892_v29, %v1672_v51 }
 0x48f   : > { %v1683_v55 = vmax.f32 %v1681_v54, 0.0 }
 0x491   : > { %1685 = vst [vmem:[%s403_s26 + $0x8] sm:$0xff] %v1683_v55 }
 0x492 PF: > { %s21_s17 = sadd.s32 1, %s2199_s17  }
 0x493   : > { %p18_p4 = scmp.ge.s32.totalorder %s21_s17, 4  }
 0x495   :  { %20 = sbr.rel (!%p18_p4) target bundleno = 1 (0x1), region = 103 }

</bundles_post_ra>
